<compile_context>
chip_gen: v5e
topology: v5e:2x2
jax: 0.10.0
libtpu: 0.0.40
codegen_flags: <defaults>
</compile_context>

<pallas_src>
import jax
import jax.numpy as jnp
from jax.experimental import pallas as pl
from jax.experimental.pallas import tpu as pltpu

# ----- synthetic configuration -----
B = 4          # bsz (number of coords)
S = 64         # num wave samples per spectrum
K = 8          # codebook size (qtz_num_embed), qtz_spectra=True
Q = 16         # qtz_latent_dim
NF = 8         # positional-encoding frequencies for wave
E = 2 * NF     # wave_embed_dim
D = E + Q      # decoder input dim (hps_combine_method='concat')
H = 32         # decoder_hidden_dim
NB = 4         # num_bands (integrator output bands)

BS = B * S     # flattened (b, s) lane extent (256, lane-dense)


def hps_decoder_kernel(we_ref, pc_ref, w1e_ref, table_ref, w2_ref, b2_ref, w3c_ref,
                       transb_ref, spec_ref, inten_ref):
    # we_ref     : (E, BSb)   bf16 wave embedding; features on sublanes, (b,s) on lanes
    # pc_ref     : (K+2, BSb) f32 per-coord rows: [softmax wts (K) | scaler | eff. bias]
    # w1e_ref    : (H, E)     bf16 wave-embed half of decoder layer 1
    # table_ref  : (H, K)     f32  w1Q @ codebook^T + b1  (codebook half of layer 1)
    # w2_ref     : (H, H)     bf16
    # b2_ref     : (H, 1)     f32
    # w3c_ref    : (H, 1)     f32  final projection stored as a column
    # transb_ref : (Rb, BSb)  f32  block-diagonal transmission / nsmpl (diag block)
    # spec_ref   : (1, BSb),  inten_ref : (Rb, 1)
    n_k = table_ref.shape[1]

    # ---- layer 1, wave-embed half: ONE bf16 lane-dense matmul shared by all K entries
    shared = jnp.dot(w1e_ref[...], we_ref[...],
                     preferred_element_type=jnp.float32)                      # [H, BSb] f32

    table = table_ref[...]                                                    # [H, K]
    w2 = w2_ref[...]                                                          # [H, H] bf16
    b2 = b2_ref[...]                                                          # [H, 1]
    wts = pc_ref[0:n_k, :]                                                    # [K, BSb]
    scaler = pc_ref[n_k:n_k + 1, :]                                           # [1, BSb]
    biaseff = pc_ref[n_k + 1:n_k + 2, :]                                      # [1, BSb]

    # ---- fused per-entry loop (fully static unroll, ~10 live vregs per iteration):
    #      layer-1 codebook column add + relu, layer-2 bf16 matmul + relu, weighted
    #      accumulation (VPU FMA).  No [H, K*BS] intermediates are ever materialized.
    acc = jnp.zeros_like(shared)                                              # [H, BSb] f32
    for k in range(n_k):
        h1_k = jnp.maximum(shared + table[:, k:k + 1], 0.0)                   # [H, BSb]
        h2_k = jnp.maximum(
            jnp.dot(w2, h1_k.astype(jnp.bfloat16),
                    preferred_element_type=jnp.float32) + b2, 0.0)            # [H, BSb]
        acc = acc + wts[k:k + 1, :] * h2_k

    # ---- final H -> 1 projection as multiply + sublane reduce (no M=1 MXU push)
    spec = jnp.sum(w3c_ref[...] * acc, axis=0, keepdims=True)                 # [1, BSb]

    # ---- scale + bias (b3 pre-folded, softmax exact) and exact sinh (EUP has slack)
    spec = scaler * spec + biaseff
    spec = 0.5 * (jnp.exp(spec) - jnp.exp(-spec))
    spec_ref[...] = spec

    # ---- HyperSpectralIntegrator: block-diagonal trans/nsmpl, multiply + lane reduce
    inten_ref[...] = jnp.sum(transb_ref[...] * spec, axis=1, keepdims=True)   # [Rb, 1]


def fold_params(codebook, w1, b1, w2, b2, w3, b3, trans, nsmpl):
    """One-time parameter folding (hoisted out of the per-call path)."""
    f32 = jnp.float32
    w1e = w1[:, :E].astype(jnp.bfloat16)                      # wave-embed half, bf16 for MXU
    table = (w1[:, E:] @ codebook.T + b1).astype(f32)         # [H, K]  (b1 folded)
    w2b = w2.astype(jnp.bfloat16)
    w3c = w3.T.astype(f32)                                    # [H, 1]
    b3s = b3[0, 0]
    # block-diagonal per-coord transmission with nsmpl folded: [B*NB, B*S] (only 16 KB)
    transb = jnp.kron(jnp.eye(B, dtype=f32), trans / nsmpl[:, None]).astype(f32)
    return w1e, table, w2b, b2.astype(f32), w3c, b3s, transb


def hps_decoder_pallas(wave_embed, logits, scaler, bias, folded, num_lane_blocks=1):
    """wave_embed:[B,S,E] logits:[B,1,K] scaler/bias:[B], folded = fold_params(...)."""
    w1e, table, w2b, b2, w3c, b3s, transb = folded
    f32 = jnp.float32
    nblk = num_lane_blocks
    assert B % nblk == 0 and (BS // nblk) % 128 == 0
    BSb = BS // nblk
    Rb = (B * NB) // nblk

    # ---- wrapper-side layout plumbing (cheap, lane-dense) ----
    we_flat = jnp.transpose(wave_embed, (2, 0, 1)).reshape(E, BS).astype(jnp.bfloat16)
    # exact softmax on the tiny [B, K] logits (restores exact normalization); merge the
    # per-coord quantities into ONE [K+2, B*S] input (b outer, s inner lane order).
    wts = jax.nn.softmax(logits[:, 0, :], axis=-1)                            # [B, K]
    percoord = jnp.concatenate(
        [wts, scaler[:, None], (scaler * b3s + bias)[:, None]], axis=1)       # [B, K+2]
    percoord = jnp.repeat(percoord.T, S, axis=1).astype(f32)                  # [K+2, B*S]

    spec_row, inten_col = pl.pallas_call(
        hps_decoder_kernel,
        # nblk=1 on v5e/v6e (single TC: one step is strictly best);
        # nblk=2 on v7x lane-blocks (b,s) into two dense 128-lane halves for both TCs.
        grid=(nblk,),
        in_specs=[
            pl.BlockSpec((E, BSb), lambda i: (0, i)),
            pl.BlockSpec((K + 2, BSb), lambda i: (0, i)),
            pl.BlockSpec((H, E), lambda i: (0, 0)),
            pl.BlockSpec((H, K), lambda i: (0, 0)),
            pl.BlockSpec((H, H), lambda i: (0, 0)),
            pl.BlockSpec((H, 1), lambda i: (0, 0)),
            pl.BlockSpec((H, 1), lambda i: (0, 0)),
            pl.BlockSpec((Rb, BSb), lambda i: (i, i)),     # batch-diagonal trans block
        ],
        out_specs=[
            pl.BlockSpec((1, BSb), lambda i: (0, i)),
            pl.BlockSpec((Rb, 1), lambda i: (i, 0)),
        ],
        out_shape=[
            jax.ShapeDtypeStruct((1, BS), f32),
            jax.ShapeDtypeStruct((B * NB, 1), f32),
        ],
        compiler_params=pltpu.CompilerParams(dimension_semantics=("parallel",)),
    )(we_flat, percoord, w1e, table, w2b, b2, w3c, transb)

    spectra = spec_row.reshape(B, S)                  # free reshape of the lane-dense row
    intensity = inten_col[:, 0].reshape(B, NB)        # rows ordered (b, band)
    return spectra, intensity


def default_lane_blocks():
    # 2-way "parallel" split only helps where there are 2 TensorCores per chip (v7x).
    try:
        kind = jax.devices()[0].device_kind.lower()
        if "v7" in kind:
            return 2
    except Exception:
        pass
    return 1


# ---------- glue: HyperSpectralConverter (redshift shift + norm + positional encoding) ----------
def hyperspectral_converter(wave, redshift, wave_bound):
    # wave: [B, S, 1] observed lambda, redshift: [B] (regression). Returns [B, S, E].
    lo, hi = wave_bound
    emitted = wave / (1.0 + redshift[:, None, None])          # shift to emitted frame
    normed = (emitted - lo) / (hi - lo)                       # linear normalization
    freqs = (2.0 ** jnp.arange(NF, dtype=jnp.float32)) * jnp.pi
    ang = normed * freqs[None, None, :]                       # [B, S, NF]
    return jnp.concatenate([jnp.sin(ang), jnp.cos(ang)], axis=-1)   # [B, S, E]


# ---------- plain-JAX reference (direct, unfused translation of the module path) ----------
def reference_forward(wave_embed, codebook, logits, scaler, bias,
                      w1, b1, w2, b2, w3, b3, trans, nsmpl):
    x = jnp.concatenate([
        jnp.broadcast_to(wave_embed[:, None], (B, K, S, E)),
        jnp.broadcast_to(codebook[None, :, None, :], (B, K, S, Q))], axis=-1)   # [B,K,S,D]
    h = jnp.maximum(jnp.einsum('hd,bksd->bksh', w1, x) + b1[:, 0], 0.0)
    h = jnp.maximum(jnp.einsum('gh,bksh->bksg', w2, h) + b2[:, 0], 0.0)
    y = (jnp.einsum('oh,bksh->bkso', w3, h) + b3[:, 0])[..., 0]                 # [B,K,S]
    wts = jax.nn.softmax(logits[:, 0, :], axis=-1)                              # [B,K]
    spec = jnp.einsum('bk,bks->bs', wts, y)
    spec = scaler[:, None] * spec + bias[:, None]
    spec = jnp.sinh(spec)
    inten = spec @ (trans.T / nsmpl[None, :])
    return spec, inten


if __name__ == "__main__":
    key = jax.random.PRNGKey(0)
    ks = jax.random.split(key, 12)

    # inputs that the module's forward() receives
    wave = jax.random.uniform(ks[0], (B, S, 1), jnp.float32, 3000.0, 10000.0)  # [bsz,nsmpl,1]
    wave_bound = (3000.0, 10000.0)
    redshift = jax.random.uniform(ks[1], (B,), jnp.float32, 0.0, 2.0)          # ret['redshift']
    logits = jax.random.normal(ks[2], (B, 1, K), jnp.float32)                  # latents (logits)
    scaler = jax.random.uniform(ks[3], (B,), jnp.float32, 0.5, 1.5)            # ret['scaler']
    bias = 0.1 * jax.random.normal(ks[4], (B,), jnp.float32)                   # ret['bias']
    trans = jax.random.uniform(ks[5], (NB, S), jnp.float32)                    # [nbands, nsmpl]
    nsmpl_per_band = jnp.full((NB,), float(S) / NB, jnp.float32)               # [num_bands]

    # parameters (deterministic synthetic init)
    codebook = 0.5 * jax.random.normal(ks[6], (K, Q), jnp.float32)             # codebook.weight
    w1 = jax.random.normal(ks[7], (H, D), jnp.float32) / jnp.sqrt(D)           # BasicDecoder L0
    b1 = 0.05 * jax.random.normal(ks[8], (H, 1), jnp.float32)
    w2 = jax.random.normal(ks[9], (H, H), jnp.float32) / jnp.sqrt(H)           # BasicDecoder L1
    b2 = 0.05 * jax.random.normal(ks[10], (H, 1), jnp.float32)
    w3 = jax.random.normal(ks[11], (1, H), jnp.float32) / jnp.sqrt(H)          # lout (H -> 1)
    b3 = jnp.zeros((1, 1), jnp.float32)

    # converter (glue, plain JAX) — only the [B,S,E] wave embedding is materialized
    wave_embed = hyperspectral_converter(wave, redshift, wave_bound)

    # one-time parameter folding (hoisted out of the per-call path)
    folded = fold_params(codebook, w1, b1, w2, b2, w3, b3, trans, nsmpl_per_band)

    spectra, intensity = hps_decoder_pallas(
        wave_embed, logits, scaler, bias, folded,
        num_lane_blocks=default_lane_blocks())
    jax.block_until_ready((spectra, intensity))

    spectra_ref, intensity_ref = reference_forward(
        wave_embed, codebook, logits, scaler, bias, w1, b1, w2, b2, w3, b3,
        trans, nsmpl_per_band)

    assert spectra.shape == (B, S) and intensity.shape == (B, NB)
    assert jnp.allclose(spectra, spectra_ref, rtol=2e-2, atol=2e-2)
    assert jnp.allclose(intensity, intensity_ref, rtol=2e-2, atol=2e-2)

    # TODO(synk): spectra-supervision branch (forward_sup_spectra) and the
    # classification-redshift branch (redshift-bin weighted sum) are not lowered.
    print("KERNEL_OK")
</pallas_src>

<mosaic_0001>
module attributes {stable_mosaic.version = 11 : i64} {
  func.func @hps_decoder_kernel(%arg0: i32, %arg1: memref<16x256xbf16, #tpu.memory_space<vmem>>, %arg2: memref<10x256xf32, #tpu.memory_space<vmem>>, %arg3: memref<32x16xbf16, #tpu.memory_space<vmem>>, %arg4: memref<32x8xf32, #tpu.memory_space<vmem>>, %arg5: memref<32x32xbf16, #tpu.memory_space<vmem>>, %arg6: memref<32x1xf32, #tpu.memory_space<vmem>>, %arg7: memref<32x1xf32, #tpu.memory_space<vmem>>, %arg8: memref<16x256xf32, #tpu.memory_space<vmem>>, %arg9: memref<1x256xf32, #tpu.memory_space<vmem>>, %arg10: memref<16x1xf32, #tpu.memory_space<vmem>>) attributes {dimension_semantics = [#tpu.dimension_semantics<parallel>], iteration_bounds = array<i64: 1>, scalar_prefetch = 0 : i64, scratch_operands = 0 : i64, tpu.core_type = #tpu.core_type<tc>, window_params = [{transform_indices = @transform_0, window_bounds = array<i64: 16, 256>}, {transform_indices = @transform_1, window_bounds = array<i64: 10, 256>}, {pipeline_mode = #tpu.pipeline_mode<synchronous>, transform_indices = @transform_2, window_bounds = array<i64: 32, 16>}, {pipeline_mode = #tpu.pipeline_mode<synchronous>, transform_indices = @transform_3, window_bounds = array<i64: 32, 8>}, {pipeline_mode = #tpu.pipeline_mode<synchronous>, transform_indices = @transform_4, window_bounds = array<i64: 32, 32>}, {pipeline_mode = #tpu.pipeline_mode<synchronous>, transform_indices = @transform_5, window_bounds = array<i64: 32, 1>}, {pipeline_mode = #tpu.pipeline_mode<synchronous>, transform_indices = @transform_6, window_bounds = array<i64: 32, 1>}, {transform_indices = @transform_7, window_bounds = array<i64: 16, 256>}, {transform_indices = @transform_8, window_bounds = array<i64: 1, 256>}, {transform_indices = @transform_9, window_bounds = array<i64: 16, 1>}]} {
    %c0 = arith.constant 0 : index
    %c0_0 = arith.constant 0 : index
    %0 = vector.load %arg3[%c0, %c0_0] : memref<32x16xbf16, #tpu.memory_space<vmem>>, vector<32x16xbf16>
    %c0_1 = arith.constant 0 : index
    %c0_2 = arith.constant 0 : index
    %1 = vector.load %arg1[%c0_1, %c0_2] : memref<16x256xbf16, #tpu.memory_space<vmem>>, vector<16x256xbf16>
    %cst = arith.constant dense<0.000000e+00> : vector<32x256xf32>
    %2 = tpu.matmul %0, %1, %cst {dimension_numbers = #tpu.dot_dimension_numbers<[1], [0], [0], [1], [0, 0, 1, 1], [], []>} : vector<32x16xbf16>, vector<16x256xbf16>, vector<32x256xf32> -> vector<32x256xf32>
    %c0_3 = arith.constant 0 : index
    %c0_4 = arith.constant 0 : index
    %3 = vector.load %arg4[%c0_3, %c0_4] : memref<32x8xf32, #tpu.memory_space<vmem>>, vector<32x8xf32>
    %c0_5 = arith.constant 0 : index
    %c0_6 = arith.constant 0 : index
    %4 = vector.load %arg5[%c0_5, %c0_6] : memref<32x32xbf16, #tpu.memory_space<vmem>>, vector<32x32xbf16>
    %c0_7 = arith.constant 0 : index
    %c0_8 = arith.constant 0 : index
    %5 = vector.load %arg6[%c0_7, %c0_8] : memref<32x1xf32, #tpu.memory_space<vmem>>, vector<32x1xf32>
    %c0_9 = arith.constant 0 : index
    %c0_10 = arith.constant 0 : index
    %6 = vector.load %arg2[%c0_9, %c0_10] : memref<10x256xf32, #tpu.memory_space<vmem>>, vector<8x256xf32>
    %c8 = arith.constant 8 : index
    %c0_11 = arith.constant 0 : index
    %7 = vector.load %arg2[%c8, %c0_11] : memref<10x256xf32, #tpu.memory_space<vmem>>, vector<1x256xf32>
    %c9 = arith.constant 9 : index
    %c0_12 = arith.constant 0 : index
    %8 = vector.load %arg2[%c9, %c0_12] : memref<10x256xf32, #tpu.memory_space<vmem>>, vector<1x256xf32>
    %cst_13 = arith.constant 0.000000e+00 : f32
    %9 = vector.broadcast %cst_13 : f32 to vector<32x256xf32>
    %10 = vector.extract_strided_slice %3 {offsets = [0, 0], sizes = [32, 1], strides = [1, 1]} : vector<32x8xf32> to vector<32x1xf32>
    %11 = vector.broadcast %10 : vector<32x1xf32> to vector<32x256xf32>
    %12 = arith.addf %2, %11 : vector<32x256xf32>
    %cst_14 = arith.constant 0.000000e+00 : f32
    %13 = vector.broadcast %cst_14 : f32 to vector<32x256xf32>
    %14 = arith.maximumf %12, %13 : vector<32x256xf32>
    %15 = arith.truncf %14 : vector<32x256xf32> to vector<32x256xbf16>
    %cst_15 = arith.constant dense<0.000000e+00> : vector<32x256xf32>
    %16 = tpu.matmul %4, %15, %cst_15 {dimension_numbers = #tpu.dot_dimension_numbers<[1], [0], [0], [1], [0, 0, 1, 1], [], []>} : vector<32x32xbf16>, vector<32x256xbf16>, vector<32x256xf32> -> vector<32x256xf32>
    %17 = vector.broadcast %5 : vector<32x1xf32> to vector<32x256xf32>
    %18 = arith.addf %16, %17 : vector<32x256xf32>
    %cst_16 = arith.constant 0.000000e+00 : f32
    %19 = vector.broadcast %cst_16 : f32 to vector<32x256xf32>
    %20 = arith.maximumf %18, %19 : vector<32x256xf32>
    %21 = vector.extract_strided_slice %6 {offsets = [0, 0], sizes = [1, 256], strides = [1, 1]} : vector<8x256xf32> to vector<1x256xf32>
    %22 = vector.broadcast %21 : vector<1x256xf32> to vector<32x256xf32>
    %23 = arith.mulf %22, %20 : vector<32x256xf32>
    %24 = arith.addf %9, %23 : vector<32x256xf32>
    %25 = vector.extract_strided_slice %3 {offsets = [0, 1], sizes = [32, 1], strides = [1, 1]} : vector<32x8xf32> to vector<32x1xf32>
    %26 = vector.broadcast %25 : vector<32x1xf32> to vector<32x256xf32>
    %27 = arith.addf %2, %26 : vector<32x256xf32>
    %cst_17 = arith.constant 0.000000e+00 : f32
    %28 = vector.broadcast %cst_17 : f32 to vector<32x256xf32>
    %29 = arith.maximumf %27, %28 : vector<32x256xf32>
    %30 = arith.truncf %29 : vector<32x256xf32> to vector<32x256xbf16>
    %cst_18 = arith.constant dense<0.000000e+00> : vector<32x256xf32>
    %31 = tpu.matmul %4, %30, %cst_18 {dimension_numbers = #tpu.dot_dimension_numbers<[1], [0], [0], [1], [0, 0, 1, 1], [], []>} : vector<32x32xbf16>, vector<32x256xbf16>, vector<32x256xf32> -> vector<32x256xf32>
    %32 = vector.broadcast %5 : vector<32x1xf32> to vector<32x256xf32>
    %33 = arith.addf %31, %32 : vector<32x256xf32>
    %cst_19 = arith.constant 0.000000e+00 : f32
    %34 = vector.broadcast %cst_19 : f32 to vector<32x256xf32>
    %35 = arith.maximumf %33, %34 : vector<32x256xf32>
    %36 = vector.extract_strided_slice %6 {offsets = [1, 0], sizes = [1, 256], strides = [1, 1]} : vector<8x256xf32> to vector<1x256xf32>
    %37 = vector.broadcast %36 : vector<1x256xf32> to vector<32x256xf32>
    %38 = arith.mulf %37, %35 : vector<32x256xf32>
    %39 = arith.addf %24, %38 : vector<32x256xf32>
    %40 = vector.extract_strided_slice %3 {offsets = [0, 2], sizes = [32, 1], strides = [1, 1]} : vector<32x8xf32> to vector<32x1xf32>
    %41 = vector.broadcast %40 : vector<32x1xf32> to vector<32x256xf32>
    %42 = arith.addf %2, %41 : vector<32x256xf32>
    %cst_20 = arith.constant 0.000000e+00 : f32
    %43 = vector.broadcast %cst_20 : f32 to vector<32x256xf32>
    %44 = arith.maximumf %42, %43 : vector<32x256xf32>
    %45 = arith.truncf %44 : vector<32x256xf32> to vector<32x256xbf16>
    %cst_21 = arith.constant dense<0.000000e+00> : vector<32x256xf32>
    %46 = tpu.matmul %4, %45, %cst_21 {dimension_numbers = #tpu.dot_dimension_numbers<[1], [0], [0], [1], [0, 0, 1, 1], [], []>} : vector<32x32xbf16>, vector<32x256xbf16>, vector<32x256xf32> -> vector<32x256xf32>
    %47 = vector.broadcast %5 : vector<32x1xf32> to vector<32x256xf32>
    %48 = arith.addf %46, %47 : vector<32x256xf32>
    %cst_22 = arith.constant 0.000000e+00 : f32
    %49 = vector.broadcast %cst_22 : f32 to vector<32x256xf32>
    %50 = arith.maximumf %48, %49 : vector<32x256xf32>
    %51 = vector.extract_strided_slice %6 {offsets = [2, 0], sizes = [1, 256], strides = [1, 1]} : vector<8x256xf32> to vector<1x256xf32>
    %52 = vector.broadcast %51 : vector<1x256xf32> to vector<32x256xf32>
    %53 = arith.mulf %52, %50 : vector<32x256xf32>
    %54 = arith.addf %39, %53 : vector<32x256xf32>
    %55 = vector.extract_strided_slice %3 {offsets = [0, 3], sizes = [32, 1], strides = [1, 1]} : vector<32x8xf32> to vector<32x1xf32>
    %56 = vector.broadcast %55 : vector<32x1xf32> to vector<32x256xf32>
    %57 = arith.addf %2, %56 : vector<32x256xf32>
    %cst_23 = arith.constant 0.000000e+00 : f32
    %58 = vector.broadcast %cst_23 : f32 to vector<32x256xf32>
    %59 = arith.maximumf %57, %58 : vector<32x256xf32>
    %60 = arith.truncf %59 : vector<32x256xf32> to vector<32x256xbf16>
    %cst_24 = arith.constant dense<0.000000e+00> : vector<32x256xf32>
    %61 = tpu.matmul %4, %60, %cst_24 {dimension_numbers = #tpu.dot_dimension_numbers<[1], [0], [0], [1], [0, 0, 1, 1], [], []>} : vector<32x32xbf16>, vector<32x256xbf16>, vector<32x256xf32> -> vector<32x256xf32>
    %62 = vector.broadcast %5 : vector<32x1xf32> to vector<32x256xf32>
    %63 = arith.addf %61, %62 : vector<32x256xf32>
    %cst_25 = arith.constant 0.000000e+00 : f32
    %64 = vector.broadcast %cst_25 : f32 to vector<32x256xf32>
    %65 = arith.maximumf %63, %64 : vector<32x256xf32>
    %66 = vector.extract_strided_slice %6 {offsets = [3, 0], sizes = [1, 256], strides = [1, 1]} : vector<8x256xf32> to vector<1x256xf32>
    %67 = vector.broadcast %66 : vector<1x256xf32> to vector<32x256xf32>
    %68 = arith.mulf %67, %65 : vector<32x256xf32>
    %69 = arith.addf %54, %68 : vector<32x256xf32>
    %70 = vector.extract_strided_slice %3 {offsets = [0, 4], sizes = [32, 1], strides = [1, 1]} : vector<32x8xf32> to vector<32x1xf32>
    %71 = vector.broadcast %70 : vector<32x1xf32> to vector<32x256xf32>
    %72 = arith.addf %2, %71 : vector<32x256xf32>
    %cst_26 = arith.constant 0.000000e+00 : f32
    %73 = vector.broadcast %cst_26 : f32 to vector<32x256xf32>
    %74 = arith.maximumf %72, %73 : vector<32x256xf32>
    %75 = arith.truncf %74 : vector<32x256xf32> to vector<32x256xbf16>
    %cst_27 = arith.constant dense<0.000000e+00> : vector<32x256xf32>
    %76 = tpu.matmul %4, %75, %cst_27 {dimension_numbers = #tpu.dot_dimension_numbers<[1], [0], [0], [1], [0, 0, 1, 1], [], []>} : vector<32x32xbf16>, vector<32x256xbf16>, vector<32x256xf32> -> vector<32x256xf32>
    %77 = vector.broadcast %5 : vector<32x1xf32> to vector<32x256xf32>
    %78 = arith.addf %76, %77 : vector<32x256xf32>
    %cst_28 = arith.constant 0.000000e+00 : f32
    %79 = vector.broadcast %cst_28 : f32 to vector<32x256xf32>
    %80 = arith.maximumf %78, %79 : vector<32x256xf32>
    %81 = vector.extract_strided_slice %6 {offsets = [4, 0], sizes = [1, 256], strides = [1, 1]} : vector<8x256xf32> to vector<1x256xf32>
    %82 = vector.broadcast %81 : vector<1x256xf32> to vector<32x256xf32>
    %83 = arith.mulf %82, %80 : vector<32x256xf32>
    %84 = arith.addf %69, %83 : vector<32x256xf32>
    %85 = vector.extract_strided_slice %3 {offsets = [0, 5], sizes = [32, 1], strides = [1, 1]} : vector<32x8xf32> to vector<32x1xf32>
    %86 = vector.broadcast %85 : vector<32x1xf32> to vector<32x256xf32>
    %87 = arith.addf %2, %86 : vector<32x256xf32>
    %cst_29 = arith.constant 0.000000e+00 : f32
    %88 = vector.broadcast %cst_29 : f32 to vector<32x256xf32>
    %89 = arith.maximumf %87, %88 : vector<32x256xf32>
    %90 = arith.truncf %89 : vector<32x256xf32> to vector<32x256xbf16>
    %cst_30 = arith.constant dense<0.000000e+00> : vector<32x256xf32>
    %91 = tpu.matmul %4, %90, %cst_30 {dimension_numbers = #tpu.dot_dimension_numbers<[1], [0], [0], [1], [0, 0, 1, 1], [], []>} : vector<32x32xbf16>, vector<32x256xbf16>, vector<32x256xf32> -> vector<32x256xf32>
    %92 = vector.broadcast %5 : vector<32x1xf32> to vector<32x256xf32>
    %93 = arith.addf %91, %92 : vector<32x256xf32>
    %cst_31 = arith.constant 0.000000e+00 : f32
    %94 = vector.broadcast %cst_31 : f32 to vector<32x256xf32>
    %95 = arith.maximumf %93, %94 : vector<32x256xf32>
    %96 = vector.extract_strided_slice %6 {offsets = [5, 0], sizes = [1, 256], strides = [1, 1]} : vector<8x256xf32> to vector<1x256xf32>
    %97 = vector.broadcast %96 : vector<1x256xf32> to vector<32x256xf32>
    %98 = arith.mulf %97, %95 : vector<32x256xf32>
    %99 = arith.addf %84, %98 : vector<32x256xf32>
    %100 = vector.extract_strided_slice %3 {offsets = [0, 6], sizes = [32, 1], strides = [1, 1]} : vector<32x8xf32> to vector<32x1xf32>
    %101 = vector.broadcast %100 : vector<32x1xf32> to vector<32x256xf32>
    %102 = arith.addf %2, %101 : vector<32x256xf32>
    %cst_32 = arith.constant 0.000000e+00 : f32
    %103 = vector.broadcast %cst_32 : f32 to vector<32x256xf32>
    %104 = arith.maximumf %102, %103 : vector<32x256xf32>
    %105 = arith.truncf %104 : vector<32x256xf32> to vector<32x256xbf16>
    %cst_33 = arith.constant dense<0.000000e+00> : vector<32x256xf32>
    %106 = tpu.matmul %4, %105, %cst_33 {dimension_numbers = #tpu.dot_dimension_numbers<[1], [0], [0], [1], [0, 0, 1, 1], [], []>} : vector<32x32xbf16>, vector<32x256xbf16>, vector<32x256xf32> -> vector<32x256xf32>
    %107 = vector.broadcast %5 : vector<32x1xf32> to vector<32x256xf32>
    %108 = arith.addf %106, %107 : vector<32x256xf32>
    %cst_34 = arith.constant 0.000000e+00 : f32
    %109 = vector.broadcast %cst_34 : f32 to vector<32x256xf32>
    %110 = arith.maximumf %108, %109 : vector<32x256xf32>
    %111 = vector.extract_strided_slice %6 {offsets = [6, 0], sizes = [1, 256], strides = [1, 1]} : vector<8x256xf32> to vector<1x256xf32>
    %112 = vector.broadcast %111 : vector<1x256xf32> to vector<32x256xf32>
    %113 = arith.mulf %112, %110 : vector<32x256xf32>
    %114 = arith.addf %99, %113 : vector<32x256xf32>
    %115 = vector.extract_strided_slice %3 {offsets = [0, 7], sizes = [32, 1], strides = [1, 1]} : vector<32x8xf32> to vector<32x1xf32>
    %116 = vector.broadcast %115 : vector<32x1xf32> to vector<32x256xf32>
    %117 = arith.addf %2, %116 : vector<32x256xf32>
    %cst_35 = arith.constant 0.000000e+00 : f32
    %118 = vector.broadcast %cst_35 : f32 to vector<32x256xf32>
    %119 = arith.maximumf %117, %118 : vector<32x256xf32>
    %120 = arith.truncf %119 : vector<32x256xf32> to vector<32x256xbf16>
    %cst_36 = arith.constant dense<0.000000e+00> : vector<32x256xf32>
    %121 = tpu.matmul %4, %120, %cst_36 {dimension_numbers = #tpu.dot_dimension_numbers<[1], [0], [0], [1], [0, 0, 1, 1], [], []>} : vector<32x32xbf16>, vector<32x256xbf16>, vector<32x256xf32> -> vector<32x256xf32>
    %122 = vector.broadcast %5 : vector<32x1xf32> to vector<32x256xf32>
    %123 = arith.addf %121, %122 : vector<32x256xf32>
    %cst_37 = arith.constant 0.000000e+00 : f32
    %124 = vector.broadcast %cst_37 : f32 to vector<32x256xf32>
    %125 = arith.maximumf %123, %124 : vector<32x256xf32>
    %126 = vector.extract_strided_slice %6 {offsets = [7, 0], sizes = [1, 256], strides = [1, 1]} : vector<8x256xf32> to vector<1x256xf32>
    %127 = vector.broadcast %126 : vector<1x256xf32> to vector<32x256xf32>
    %128 = arith.mulf %127, %125 : vector<32x256xf32>
    %129 = arith.addf %114, %128 : vector<32x256xf32>
    %c0_38 = arith.constant 0 : index
    %c0_39 = arith.constant 0 : index
    %130 = vector.load %arg7[%c0_38, %c0_39] : memref<32x1xf32, #tpu.memory_space<vmem>>, vector<32x1xf32>
    %131 = vector.broadcast %130 : vector<32x1xf32> to vector<32x256xf32>
    %132 = arith.mulf %131, %129 : vector<32x256xf32>
    %cst_40 = arith.constant dense<0.000000e+00> : vector<256xf32>
    %133 = vector.multi_reduction <add>, %132, %cst_40 [0] : vector<32x256xf32> to vector<256xf32>
    %134 = vector.shape_cast %133 : vector<256xf32> to vector<1x256xf32>
    %135 = arith.mulf %7, %134 : vector<1x256xf32>
    %136 = arith.addf %135, %8 : vector<1x256xf32>
    %137 = math.exp %136 : vector<1x256xf32>
    %cst_41 = arith.constant 0.000000e+00 : f32
    %138 = vector.broadcast %cst_41 : f32 to vector<1x256xf32>
    %139 = arith.subf %138, %136 : vector<1x256xf32>
    %140 = math.exp %139 : vector<1x256xf32>
    %141 = arith.subf %137, %140 : vector<1x256xf32>
    %cst_42 = arith.constant 5.000000e-01 : f32
    %142 = vector.broadcast %cst_42 : f32 to vector<1x256xf32>
    %143 = arith.mulf %142, %141 : vector<1x256xf32>
    %c0_43 = arith.constant 0 : index
    %c0_44 = arith.constant 0 : index
    %144 = vector.load %arg9[%c0_43, %c0_44] : memref<1x256xf32, #tpu.memory_space<vmem>>, vector<1x256xf32>
    tpu.vector_store %arg9[%c0_43, %c0_44], %143 {strides = array<i32>} : memref<1x256xf32, #tpu.memory_space<vmem>>, vector<1x256xf32>,
    %c0_45 = arith.constant 0 : index
    %c0_46 = arith.constant 0 : index
    %145 = vector.load %arg8[%c0_45, %c0_46] : memref<16x256xf32, #tpu.memory_space<vmem>>, vector<16x256xf32>
    %146 = vector.broadcast %143 : vector<1x256xf32> to vector<16x256xf32>
    %147 = arith.mulf %145, %146 : vector<16x256xf32>
    %cst_47 = arith.constant dense<0.000000e+00> : vector<16xf32>
    %148 = vector.multi_reduction <add>, %147, %cst_47 [1] : vector<16x256xf32> to vector<16xf32>
    %149 = vector.shape_cast %148 : vector<16xf32> to vector<16x1xf32>
    %c0_48 = arith.constant 0 : index
    %c0_49 = arith.constant 0 : index
    %150 = vector.load %arg10[%c0_48, %c0_49] : memref<16x1xf32, #tpu.memory_space<vmem>>, vector<16x1xf32>
    tpu.vector_store %arg10[%c0_48, %c0_49], %149 {strides = array<i32>} : memref<16x1xf32, #tpu.memory_space<vmem>>, vector<16x1xf32>,
    return
  }
  func.func @transform_0(%arg0: i32) -> (i32, i32) {
    %c0_i32 = arith.constant 0 : i32
    %c0_i32_0 = arith.constant 0 : i32
    return %c0_i32, %arg0 : i32, i32
  }
  func.func @transform_1(%arg0: i32) -> (i32, i32) {
    %c0_i32 = arith.constant 0 : i32
    %c0_i32_0 = arith.constant 0 : i32
    return %c0_i32, %arg0 : i32, i32
  }
  func.func @transform_2(%arg0: i32) -> (i32, i32) {
    %c0_i32 = arith.constant 0 : i32
    %c0_i32_0 = arith.constant 0 : i32
    %c0_i32_1 = arith.constant 0 : i32
    return %c0_i32, %c0_i32_0 : i32, i32
  }
  func.func @transform_3(%arg0: i32) -> (i32, i32) {
    %c0_i32 = arith.constant 0 : i32
    %c0_i32_0 = arith.constant 0 : i32
    %c0_i32_1 = arith.constant 0 : i32
    return %c0_i32, %c0_i32_0 : i32, i32
  }
  func.func @transform_4(%arg0: i32) -> (i32, i32) {
    %c0_i32 = arith.constant 0 : i32
    %c0_i32_0 = arith.constant 0 : i32
    %c0_i32_1 = arith.constant 0 : i32
    return %c0_i32, %c0_i32_0 : i32, i32
  }
  func.func @transform_5(%arg0: i32) -> (i32, i32) {
    %c0_i32 = arith.constant 0 : i32
    %c0_i32_0 = arith.constant 0 : i32
    %c0_i32_1 = arith.constant 0 : i32
    return %c0_i32, %c0_i32_0 : i32, i32
  }
  func.func @transform_6(%arg0: i32) -> (i32, i32) {
    %c0_i32 = arith.constant 0 : i32
    %c0_i32_0 = arith.constant 0 : i32
    %c0_i32_1 = arith.constant 0 : i32
    return %c0_i32, %c0_i32_0 : i32, i32
  }
  func.func @transform_7(%arg0: i32) -> (i32, i32) {
    %c0_i32 = arith.constant 0 : i32
    return %arg0, %arg0 : i32, i32
  }
  func.func @transform_8(%arg0: i32) -> (i32, i32) {
    %c0_i32 = arith.constant 0 : i32
    %c0_i32_0 = arith.constant 0 : i32
    return %c0_i32, %arg0 : i32, i32
  }
  func.func @transform_9(%arg0: i32) -> (i32, i32) {
    %c0_i32 = arith.constant 0 : i32
    %c0_i32_0 = arith.constant 0 : i32
    return %arg0, %c0_i32 : i32, i32
  }
}

</mosaic_0001>

<bundles_post_ra>
// kernel: tpu_custom_call.1
= control target key start
LH: loop header
LB: loop body
LE: loop exit
PB: predicated region body
PF: predicated region fallthrough
CT: control target
= control target key end

     0   :  { %v1209_v3 = vmov 1   ;;  %v1210_v4 = vmov 0   ;;  %s1835_s0 = inlined_call_operand.vmem [shape: bf16[16,256], index: 0, kind: input, shape index: {}]   ;;  %s1836_s1 = inlined_call_operand.vmem [shape: f32[10,256], index: 1, kind: input, shape index: {}]   ;;  %s1837_s2 = inlined_call_operand.vmem [shape: bf16[32,16], index: 2, kind: input, shape index: {}]   ;;  %s1838_s3 = inlined_call_operand.vmem [shape: f32[32,8], index: 3, kind: input, shape index: {}]   ;;  %s1839_s4 = inlined_call_operand.vmem [shape: bf16[32,32], index: 4, kind: input, shape index: {}]   ;;  %s1840_s5 = inlined_call_operand.vmem [shape: f32[32,1], index: 5, kind: input, shape index: {}]   ;;  %s1841_s6 = inlined_call_operand.vmem [shape: f32[32,1], index: 6, kind: input, shape index: {}]   ;;  %s1842_s7 = inlined_call_operand.vmem [shape: f32[16,256], index: 7, kind: input, shape index: {}]   ;;  %s1843_s8 = inlined_call_operand.hbm [shape: f32[1,256], index: 8, kind: output, shape index: {0}]   ;;  %s1844_s9 = inlined_call_operand.vmem [shape: f32[16,1], index: 9, kind: output, shape index: {1}]  }
   0x1   :  { %v1271_v0 = vld [vmem:[%s1838_s3 + $0x10] sm:$0xff]  ;;  %v1276_v1 = vld [vmem:[%s1838_s3] sm:$0xff]  ;;  %1156 = vset.pattern.permute.xlu2 %v1209_v3  ;;  %1155 = vset.pattern.permute.xlu1 %v1210_v4  ;;  %v1140_v5 = vld [vmem:[%s1835_s0 + $0x4] sm:$0xf0] }
   0x2   :  { %v1085_v2 = vld [vmem:[%s1835_s0] sm:$0xf]  ;;  %v1139_v6 = vld [vmem:[%s1835_s0 + $0x4] sm:$0xf]  ;;  %v1087_v7 = vld [vmem:[%s1835_s0 + $0x8] sm:$0xf0]  ;;  %1154 = vset.pattern.permute.xlu0 %v1210_v4  ;;  %272 = vperm.xlu2 %1156, %v1271_v0  }
   0x3   :  { %v1086_v8 = vor.u32 %v1140_v5, %v1085_v2  ;;  %v1090_v9 = vor.u32 %v1139_v6, %v1087_v7  ;;  %134 = vperm.xlu0 %1154, %v1271_v0   ;;  %124 = vperm.xlu1 %1155, %v1276_v1   ;;  %v1137_v10 = vld [vmem:[%s1837_s2] sm:$0xff]  ;;  %v1138_v11 = vld [vmem:[%s1837_s2 + $0x8] sm:$0xff] }
   0x4   :  { %15 = vsyncpa [#allocation3], 0  ;;  %vm59_vm0 = vcmask 130048   ;;  %v107_v12 = vld [vmem:[%s1838_s3 + $0x18] sm:$0xff]  ;;  %v105_v13 = vld [vmem:[%s1838_s3 + $0x8] sm:$0xff]  ;;  %v1211_v14 = vmov 2  }
   0x5   :  { %73 = vmatpush.bf16.msra.mxu0 %v1086_v8  ;;  %1143 = vmatpush.bf16.msra.mxu2 %v1086_v8  ;;  %v1212_v15 = vmov 3   ;;  %v1213_v16 = vmov 4   ;;  %v1214_v17 = vmov 5   ;;  %v1215_v18 = vmov 6   ;;  %s1062_s29 = sshll.u32 %s1843_s8, 4  ;;  %s1217_s30 = smov [#allocation2]   ;;  %s1063_s29 = int_to_ptr.hbm [resolvable:$true] %s1062_s29 }
   0x6   :  { %92 = vmatpush.bf16.msra.mxu1 %v1090_v9  ;;  %1144 = vmatpush.bf16.msra.mxu3 %v1090_v9  ;;  %v1216_v19 = vmov 7   ;;  %vm192_vm1 = vcmask 261120   ;;  %vm1016_vm2 = vcmask 1040384   ;;  %s1060_s10 = sshll.u32 %s1217_s30, 4  ;;  %vm1052_vm4 = vcmask 7168   ;;  %s1061_s10 = int_to_ptr.vmem [resolvable:$true] %s1060_s10 }
   0x8   :  { %1091 = vmatmul.msk.bf16.vlgmr.msra.gmra.mxu0 %vm59_vm0, %v1137_v10  ;;  %1092 = vmatmul.msk.bf16.vlgmr.msra.gmra.mxu2 %vm59_vm0, %v1138_v11 }
   0x9   :  { %1093 = vmatmul.msk.bf16.vlgmr.msra.gmra.mxu1 %vm59_vm0, %v1137_v10  ;;  %1094 = vmatmul.msk.bf16.vlgmr.msra.gmra.mxu3 %vm59_vm0, %v1138_v11 }
   0xa   :  { %276 = vperm.xlu2 %1156, %v107_v12  }
   0xb   :  { %139 = vperm.xlu0 %1154, %v107_v12   ;;  %129 = vperm.xlu1 %1155, %v105_v13  }
  0x12   :  { %1159 = vset.pattern.permute.xlu2 %v1211_v14 }
  0x13   :  { %1157 = vset.pattern.permute.xlu0 %v1209_v3  ;;  %1158 = vset.pattern.permute.xlu1 %v1209_v3 }
  0x14   :  { %372 = vperm.xlu2 %1159, %v1271_v0   ;;  %264 = vperm.xlu0 %1157, %v1276_v1  }
  0x15   :  { %268 = vperm.xlu1 %1158, %v105_v13  }
  0x1c   :  { %364 = vperm.xlu2 %1159, %v1276_v1   ;;  %1161 = vset.pattern.permute.xlu0 %v1211_v14 }
  0x1d   :  { %1160 = vset.pattern.permute.xlu1 %v1211_v14  ;;  %368 = vperm.xlu0 %1161, %v105_v13  }
  0x1e   :  { %376 = vperm.xlu1 %1160, %v107_v12  }
  0x24   :  { %1163 = vset.pattern.permute.xlu2 %v1212_v15 }
  0x25   :  { %476 = vperm.xlu2 %1163, %v107_v12   ;;  %1164 = vset.pattern.permute.xlu0 %v1213_v16 }
  0x26   :  { %1162 = vset.pattern.permute.xlu1 %v1212_v15  ;;  %572 = vperm.xlu0 %1164, %v1271_v0  }
  0x27   :  { %472 = vperm.xlu1 %1162, %v1271_v0  }
  0x2d   :  { %468 = vperm.xlu2 %1163, %v105_v13  }
  0x2e   :  { %1168 = vset.pattern.permute.xlu0 %v1214_v17 }
  0x2f   :  { %464 = vperm.xlu1 %1162, %v1276_v1   ;;  %676 = vperm.xlu0 %1168, %v107_v12  }
  0x35   :  { %1166 = vset.pattern.permute.xlu2 %v1213_v16 }
  0x36   :  { %564 = vperm.xlu2 %1166, %v1276_v1  }
  0x37   :  { %1165 = vset.pattern.permute.xlu1 %v1213_v16  ;;  %1172 = vset.pattern.permute.xlu0 %v1215_v18 }
  0x38   :  { %576 = vperm.xlu1 %1165, %v107_v12   ;;  %764 = vperm.xlu0 %1172, %v1276_v1  }
  0x3e   :  { %1167 = vset.pattern.permute.xlu2 %v1214_v17 }
  0x3f   :  { %672 = vperm.xlu2 %1167, %v1271_v0  }
  0x40   :  { %568 = vperm.xlu1 %1165, %v105_v13   ;;  %1175 = vset.pattern.permute.xlu0 %v1216_v19 }
  0x41   :  { %868 = vperm.xlu0 %1175, %v105_v13  }
  0x47   :  { %668 = vperm.xlu2 %1167, %v105_v13  }
  0x48   :  { %1169 = vset.pattern.permute.xlu1 %v1214_v17 }
  0x49   :  { %664 = vperm.xlu1 %1169, %v1276_v1   ;;  %1178 = vset.pattern.permute.xlu0 %v1210_v4 }
  0x4f   :  { %1171 = vset.pattern.permute.xlu2 %v1215_v18 }
  0x50   :  { %776 = vperm.xlu2 %1171, %v107_v12  }
  0x51   :  { %1170 = vset.pattern.permute.xlu1 %v1215_v18 }
  0x52   :  { %772 = vperm.xlu1 %1170, %v1271_v0  }
  0x58   :  { %1173 = vset.pattern.permute.xlu2 %v1216_v19 }
  0x59   :  { %872 = vperm.xlu2 %1173, %v1271_v0  }
  0x5a   :  { %768 = vperm.xlu1 %1170, %v105_v13  }
  0x5c   :  { %v273_v20 = vpop.permute.xlu2 %272 }
  0x61   :  { %864 = vperm.xlu2 %1173, %v1276_v1  }
  0x62   :  { %1174 = vset.pattern.permute.xlu1 %v1216_v19 }
  0x63   :  { %876 = vperm.xlu1 %1174, %v107_v12  }
  0x64   :  { %v277_v21 = vpop.permute.xlu2 %276 }
  0x69   :  { %1177 = vset.pattern.permute.xlu2 %v1210_v4 }
  0x6b   :  { %1176 = vset.pattern.permute.xlu1 %v1210_v4 }
  0x6e   :  { %v373_v22 = vpop.permute.xlu2 %372 }
  0x75   :  { %v135_v23 = vpop.permute.xlu0 %134  ;;  %v125_v24 = vpop.permute.xlu1 %124 }
  0x76   :  { %v365_v25 = vpop.permute.xlu2 %364 }
  0x7d   :  { %v140_v26 = vpop.permute.xlu0 %139  ;;  %v130_v27 = vpop.permute.xlu1 %129 }
  0x7f   :  { %v477_v28 = vpop.permute.xlu2 %476 }
  0x85   :  { %v1323_v29 = vpop.f32.mrf.mxu0 }
  0x86   :  { %v1325_v30 = vpop.f32.mrf.mxu1  ;;  %v265_v31 = vpop.permute.xlu0 %264  ;;  %v1334_v36 = vadd.f32 %v125_v24, %v1323_v29  ;;  %v1337_v37 = vadd.f32 %v365_v25, %v1323_v29 }
  0x87   :  { %v269_v32 = vpop.permute.xlu1 %268  ;;  %v1327_v33 = vpop.permute.xlu2 %468  ;;  %v1340_v38 = vadd.f32 %v265_v31, %v1323_v29  ;;  %v1343_v39 = vadd.f32 %v265_v31, %v1325_v30  ;;  %v1346_v40 = vadd.f32 %v125_v24, %v1325_v30  ;;  %v1359_v51 = vadd.f32 %v365_v25, %v1325_v30 }
  0x88   :  { %v150_v49 = vmax.f32 %v1334_v36, 0.0  ;;  %v387_v50 = vmax.f32 %v1337_v37, 0.0 }
  0x89   :  { %v287_v52 = vmax.f32 %v1340_v38, 0.0  ;;  %v288_v53 = vmax.f32 %v1343_v39, 0.0  ;;  %v151_v55 = vmax.f32 %v1346_v40, 0.0 }
  0x8b   :  { %v1329_v34 = vpop.f32.mrf.mxu2 }
  0x8c   :  { %v1331_v35 = vpop.f32.mrf.mxu3  ;;  %v146_v42 = vadd.f32 %v135_v23, %v1329_v34  ;;  %v283_v43 = vadd.f32 %v273_v20, %v1329_v34  ;;  %v383_v59 = vadd.f32 %v373_v22, %v1329_v34 }
  0x8d   :  { %v1348_v41 = vpop.f32.mrf.mxu0  ;;  %v147_v45 = vadd.f32 %v135_v23, %v1331_v35  ;;  %v284_v48 = vadd.f32 %v273_v20, %v1331_v35  ;;  %v1369_v60 = vadd.f32 %v373_v22, %v1331_v35 }
  0x8e   :  { %v1353_v46 = vpop.f32.mrf.mxu1  ;;  %v144_v54 = vadd.f32 %v130_v27, %v1348_v41  ;;  %v154_v57 = vmax.f32 %v146_v42, 0.0  ;;  %v291_v58 = vmax.f32 %v283_v43, 0.0  ;;  %v281_v1 = vadd.f32 %v269_v32, %v1348_v41 }
  0x8f   :  { %v369_v44 = vpop.permute.xlu0 %368  ;;  %v155_v63 = vmax.f32 %v147_v45, 0.0  ;;  %v145_v0 = vadd.f32 %v130_v27, %v1353_v46  ;;  %v292_v6 = vmax.f32 %v284_v48, 0.0  ;;  %v282_v9 = vadd.f32 %v269_v32, %v1353_v46  ;;  %v112_v32 = vld [vmem:[%s1840_s5] sm:$0xff] }
  0x90   :  { %v377_v47 = vpop.permute.xlu1 %376  ;;  %v1376_v2 = vpop.permute.xlu2 %564  ;;  %v152_v8 = vmax.f32 %v144_v54, 0.0  ;;  %v381_v24 = vadd.f32 %v369_v44, %v1348_v41  ;;  %v391_v31 = vmax.f32 %v383_v59, 0.0  ;;  %v392_v45 = vmax.f32 %v1369_v60, 0.0  ;;  %164 = vperm.xlu1 %1176, %v112_v32  }
  0x91   :  { %v153_v18 = vmax.f32 %v145_v0, 0.0  ;;  %v290_v27 = vmax.f32 %v282_v9, 0.0 }
  0x92   :  { %v158_v42 = vpack.c.bf16 %v152_v8, %v150_v49 }
  0x93   :  { %v1365_v56 = vpop.f32.mrf.mxu2  ;;  %v159_v43 = vpack.c.bf16 %v153_v18, %v151_v55  ;;  %v296_v59 = vpack.c.bf16 %v290_v27, %v288_v53  ;;  %v482_v53 = vadd.f32 %v1327_v33, %v1353_v46 }
  0x94   :  { %v1371_v61 = vpop.f32.mrf.mxu3  ;;  %v148_v62 = vadd.f32 %v140_v26, %v1365_v56  ;;  %v285_v4 = vadd.f32 %v277_v21, %v1365_v56  ;;  %v385_v10 = vadd.f32 %v377_v47, %v1365_v56  ;;  %v485_v15 = vadd.f32 %v477_v28, %v1365_v56 }
  0x95   :  { %v149_v3 = vadd.f32 %v140_v26, %v1371_v61  ;;  %v286_v5 = vadd.f32 %v277_v21, %v1371_v61  ;;  %v386_v14 = vadd.f32 %v377_v47, %v1371_v61  ;;  %v486_v16 = vadd.f32 %v477_v28, %v1371_v61 }
  0x96   :  { %v156_v7 = vmax.f32 %v148_v62, 0.0  ;;  %v293_v12 = vmax.f32 %v285_v4, 0.0  ;;  %v393_v23 = vmax.f32 %v385_v10, 0.0  ;;  %v289_v26 = vmax.f32 %v281_v1, 0.0  ;;  %v1399_v62 = vld [vmem:[%s1839_s4] sm:$0xff] }
  0x97   :  { %v157_v11 = vmax.f32 %v149_v3, 0.0  ;;  %v294_v13 = vmax.f32 %v286_v5, 0.0  ;;  %v382_v28 = vadd.f32 %v369_v44, %v1353_v46  ;;  %v394_v39 = vmax.f32 %v386_v14, 0.0 }
  0x98   :  { %v160_v17 = vpack.c.bf16 %v156_v7, %v154_v57  ;;  %v1386_v19 = vpop.permute.xlu0 %572  ;;  %v297_v21 = vpack.c.bf16 %v293_v12, %v291_v58  ;;  %v493_v40 = vmax.f32 %v485_v15, 0.0  ;;  %v494_v54 = vmax.f32 %v486_v16, 0.0 }
  0x99   :  { %v161_v20 = vpack.c.bf16 %v157_v11, %v155_v63  ;;  %v298_v22 = vpack.c.bf16 %v294_v13, %v292_v6  ;;  %v473_v25 = vpop.permute.xlu1 %472  ;;  %v397_v57 = vpack.c.bf16 %v393_v23, %v391_v31  ;;  %v389_v58 = vmax.f32 %v381_v24, 0.0  ;;  %v673_v60 = vpop.permute.xlu2 %672  ;;  %v114_v24 = vld [vmem:[%s1840_s5 + $0x10] sm:$0xff] }
  0x9a   :  { %205 = vmatpush.bf16.msrb.mxu2 %v160_v17  ;;  %v483_v36 = vadd.f32 %v473_v25, %v1329_v34  ;;  %v484_v38 = vadd.f32 %v473_v25, %v1331_v35  ;;  %305 = vmatpush.bf16.msrb.mxu0 %v297_v21  ;;  %v295_v44 = vpack.c.bf16 %v289_v26, %v287_v52  ;;  %v388_v63 = vmax.f32 %v1359_v51, 0.0 }
  0x9b   :  { %224 = vmatpush.bf16.msrb.mxu3 %v161_v20  ;;  %324 = vmatpush.bf16.msrb.mxu1 %v298_v22  ;;  %v390_v49 = vmax.f32 %v382_v28, 0.0  ;;  %v398_v1 = vpack.c.bf16 %v394_v39, %v392_v45  ;;  %v481_v52 = vadd.f32 %v1327_v33, %v1348_v41  ;;  %v683_v3 = vadd.f32 %v673_v60, %v1329_v34 }
  0x9c   :  { %v491_v47 = vmax.f32 %v483_v36, 0.0  ;;  %v492_v48 = vmax.f32 %v484_v38, 0.0  ;;  %v684_v51 = vadd.f32 %v673_v60, %v1331_v35  ;;  %v395_v5 = vpack.c.bf16 %v389_v58, %v387_v50  ;;  %174 = vperm.xlu1 %1176, %v114_v24  }
  0x9d   :  { %v396_v8 = vpack.c.bf16 %v390_v49, %v388_v63  ;;  %v489_v11 = vmax.f32 %v481_v52, 0.0  ;;  %v490_v12 = vmax.f32 %v482_v53, 0.0  ;;  %v691_v13 = vmax.f32 %v683_v3, 0.0 }
  0x9e   :  { %206 = vmatpush.bf16.msrb.mxu2 %v158_v42  ;;  %v497_v55 = vpack.c.bf16 %v493_v40, %v491_v47  ;;  %v498_v0 = vpack.c.bf16 %v494_v54, %v492_v48  ;;  %306 = vmatpush.bf16.msrb.mxu0 %v295_v44  ;;  %v692_v14 = vmax.f32 %v684_v51, 0.0  ;;  %v583_v22 = vadd.f32 %v1386_v19, %v1329_v34 }
  0x9f   :  { %225 = vmatpush.bf16.msrb.mxu3 %v159_v43  ;;  %325 = vmatpush.bf16.msrb.mxu1 %v296_v59  ;;  %v584_v23 = vadd.f32 %v1386_v19, %v1331_v35  ;;  %v1434_v19 = vld [vmem:[%s1839_s4 + $0x8] sm:$0xff]  ;;  %v579_v40 = vadd.f32 %v1376_v2, %v1323_v29  ;;  %v580_v42 = vadd.f32 %v1376_v2, %v1325_v30 }
  0xa0   :  { %v591_v31 = vmax.f32 %v583_v22, 0.0  ;;  %v113_v2 = vld [vmem:[%s1840_s5 + $0x8] sm:$0xff] }
  0xa1   :  { %v465_v4 = vpop.permute.xlu1 %464  ;;  %1105 = vmatmul.msk.bf16.vlgmr.msrb.gmra.mxu2 %vm192_vm1, %v1399_v62  ;;  %1109 = vmatmul.msk.bf16.vlgmr.msrb.gmra.mxu0 %vm192_vm1, %v1399_v62  ;;  %v677_v33 = vpop.permute.xlu0 %676  ;;  %v592_v32 = vmax.f32 %v584_v23, 0.0  ;;  %v587_v48 = vmax.f32 %v579_v40, 0.0  ;;  %v588_v54 = vmax.f32 %v580_v42, 0.0 }
  0xa2   :  { %405 = vmatpush.bf16.msra.mxu2 %v397_v57  ;;  %505 = vmatpush.bf16.msra.mxu0 %v497_v55  ;;  %v479_v6 = vadd.f32 %v465_v4, %v1323_v29  ;;  %v480_v7 = vadd.f32 %v465_v4, %v1325_v30  ;;  %v685_v9 = vadd.f32 %v677_v33, %v1365_v56  ;;  %v669_v57 = vpop.permute.xlu2 %668 }
  0xa3   :  { %424 = vmatpush.bf16.msra.mxu3 %v398_v1  ;;  %524 = vmatpush.bf16.msra.mxu1 %v498_v0  ;;  %v686_v37 = vadd.f32 %v677_v33, %v1371_v61  ;;  %v681_v49 = vadd.f32 %v669_v57, %v1348_v41  ;;  %v682_v55 = vadd.f32 %v669_v57, %v1353_v46 }
  0xa4   :  { %1107 = vmatmul.msk.bf16.vlgmr.msrb.gmra.mxu3 %vm192_vm1, %v1399_v62  ;;  %1111 = vmatmul.msk.bf16.vlgmr.msrb.gmra.mxu1 %vm192_vm1, %v1399_v62  ;;  %v487_v50 = vmax.f32 %v479_v6, 0.0  ;;  %v488_v10 = vmax.f32 %v480_v7, 0.0  ;;  %v693_v15 = vmax.f32 %v685_v9, 0.0 }
  0xa5   :  { %v694_v16 = vmax.f32 %v686_v37, 0.0  ;;  %169 = vperm.xlu2 %1177, %v113_v2   ;;  %v689_v52 = vmax.f32 %v681_v49, 0.0  ;;  %v690_v53 = vmax.f32 %v682_v55, 0.0  ;;  %v965_v55 = vld [vmem:[%s1841_s6 + $0x10] sm:$0xff] }
  0xa6   :  { %406 = vmatpush.bf16.msra.mxu2 %v395_v5  ;;  %v495_v17 = vpack.c.bf16 %v489_v11, %v487_v50  ;;  %v496_v18 = vpack.c.bf16 %v490_v12, %v488_v10  ;;  %v697_v20 = vpack.c.bf16 %v693_v15, %v691_v13 }
  0xa7   :  { %425 = vmatpush.bf16.msra.mxu3 %v396_v8  ;;  %v698_v21 = vpack.c.bf16 %v694_v16, %v692_v14  ;;  %v115_v8 = vld [vmem:[%s1840_s5 + $0x18] sm:$0xff] }
  0xa8   :  { %506 = vmatpush.bf16.msra.mxu0 %v495_v17  ;;  %525 = vmatpush.bf16.msra.mxu1 %v496_v18 }
  0xaa   :  { %v577_v25 = vpop.permute.xlu1 %576  ;;  %v777_v4 = vpop.permute.xlu2 %776 }
  0xab   :  { %v585_v26 = vadd.f32 %v577_v25, %v1365_v56  ;;  %v586_v27 = vadd.f32 %v577_v25, %v1371_v61  ;;  %v785_v7 = vadd.f32 %v777_v4, %v1365_v56  ;;  %v786_v33 = vadd.f32 %v777_v4, %v1371_v61  ;;  %v765_v14 = vpop.permute.xlu0 %764 }
  0xac   :  { %705 = vmatpush.bf16.msrb.mxu0 %v697_v20  ;;  %724 = vmatpush.bf16.msrb.mxu1 %v698_v21  ;;  %v779_v18 = vadd.f32 %v765_v14, %v1323_v29  ;;  %v780_v20 = vadd.f32 %v765_v14, %v1325_v30 }
  0xad   :  { %v593_v28 = vmax.f32 %v585_v26, 0.0  ;;  %v594_v36 = vmax.f32 %v586_v27, 0.0  ;;  %179 = vperm.xlu2 %1177, %v115_v8   ;;  %v793_v10 = vmax.f32 %v785_v7, 0.0  ;;  %v794_v11 = vmax.f32 %v786_v33, 0.0 }
  0xae   :  { %v787_v24 = vmax.f32 %v779_v18, 0.0  ;;  %v788_v25 = vmax.f32 %v780_v20, 0.0 }
  0xaf   :  { %v597_v38 = vpack.c.bf16 %v593_v28, %v591_v31  ;;  %v598_v39 = vpack.c.bf16 %v594_v36, %v592_v32 }
  0xb1   :  { %1106 = vmatmul.msk.bf16.gmra.mxu2 %vm192_vm1, %v1434_v19  ;;  %624 = vmatpush.bf16.msrb.mxu3 %v598_v39 }
  0xb2   :  { %1110 = vmatmul.msk.bf16.gmra.mxu0 %vm192_vm1, %v1434_v19  ;;  %v569_v43 = vpop.permute.xlu1 %568  ;;  %605 = vmatpush.bf16.msrb.mxu2 %v597_v38 }
  0xb3   :  { %v581_v45 = vadd.f32 %v569_v43, %v1348_v41  ;;  %v582_v47 = vadd.f32 %v569_v43, %v1353_v46  ;;  %v873_v15 = vpop.permute.xlu2 %872  ;;  %v869_v39 = vpop.permute.xlu0 %868 }
  0xb4   :  { %1108 = vmatmul.msk.bf16.gmra.mxu3 %vm192_vm1, %v1434_v19  ;;  %1112 = vmatmul.msk.bf16.gmra.mxu1 %vm192_vm1, %v1434_v19  ;;  %v883_v36 = vadd.f32 %v873_v15, %v1329_v34  ;;  %v884_v38 = vadd.f32 %v873_v15, %v1331_v35  ;;  %v881_v2 = vadd.f32 %v869_v39, %v1348_v41 }
  0xb5   :  { %v589_v58 = vmax.f32 %v581_v45, 0.0  ;;  %v590_v44 = vmax.f32 %v582_v47, 0.0  ;;  %979 = vperm.xlu2 %1177, %v965_v55  }
  0xb6   :  { %v892_v57 = vmax.f32 %v884_v38, 0.0  ;;  %v889_v49 = vmax.f32 %v881_v2, 0.0 }
  0xb7   :  { %v595_v59 = vpack.c.bf16 %v589_v58, %v587_v48  ;;  %v596_v63 = vpack.c.bf16 %v590_v44, %v588_v54  ;;  %v882_v48 = vadd.f32 %v869_v39, %v1353_v46  ;;  %v891_v54 = vmax.f32 %v883_v36, 0.0 }
  0xb9   :  { %606 = vmatpush.bf16.msrb.mxu2 %v595_v59  ;;  %625 = vmatpush.bf16.msrb.mxu3 %v596_v63 }
  0xbb   :  { %v665_v0 = vpop.permute.xlu1 %664  ;;  %v865_v28 = vpop.permute.xlu2 %864 }
  0xbc   :  { %v679_v60 = vadd.f32 %v665_v0, %v1323_v29  ;;  %v680_v1 = vadd.f32 %v665_v0, %v1325_v30  ;;  %v879_v42 = vadd.f32 %v865_v28, %v1323_v29  ;;  %v880_v43 = vadd.f32 %v865_v28, %v1325_v30 }
  0xbd   :  { %v890_v29 = vmax.f32 %v882_v48, 0.0 }
  0xbe   :  { %v687_v3 = vmax.f32 %v679_v60, 0.0  ;;  %v688_v51 = vmax.f32 %v680_v1, 0.0  ;;  %v888_v44 = vmax.f32 %v880_v43, 0.0  ;;  %v1541_v1 = vld [vmem:[%s1836_s1] sm:$0xff] }
  0xbf   :  { %v1558_v8 = vperm.slane %v1541_v1, 0 }
  0xc0   :  { %v695_v5 = vpack.c.bf16 %v689_v52, %v687_v3  ;;  %v696_v6 = vpack.c.bf16 %v690_v53, %v688_v51  ;;  %v1551_v51 = vperm.slane %v1541_v1, 1 }
  0xc1   :  { %1113 = vmatmul.msk.bf16.vlgmr.msra.gmra.mxu2 %vm192_vm1, %v1399_v62 }
  0xc2   :  { %1117 = vmatmul.msk.bf16.vlgmr.msra.gmra.mxu0 %vm192_vm1, %v1399_v62  ;;  %725 = vmatpush.bf16.msrb.mxu1 %v696_v6 }
  0xc3   :  { %706 = vmatpush.bf16.msrb.mxu0 %v695_v5 }
  0xc4   :  { %1115 = vmatmul.msk.bf16.vlgmr.msra.gmra.mxu3 %vm192_vm1, %v1399_v62  ;;  %1119 = vmatmul.msk.bf16.vlgmr.msra.gmra.mxu1 %vm192_vm1, %v1399_v62  ;;  %v773_v9 = vpop.permute.xlu1 %772 }
  0xc5   :  { %v783_v37 = vadd.f32 %v773_v9, %v1329_v34  ;;  %v784_v50 = vadd.f32 %v773_v9, %v1331_v35  ;;  %v887_v35 = vmax.f32 %v879_v42, 0.0 }
  0xc7   :  { %v791_v12 = vmax.f32 %v783_v37, 0.0  ;;  %v792_v13 = vmax.f32 %v784_v50, 0.0  ;;  %v895_v30 = vpack.c.bf16 %v889_v49, %v887_v35 }
  0xc9   :  { %v797_v16 = vpack.c.bf16 %v793_v10, %v791_v12  ;;  %v798_v17 = vpack.c.bf16 %v794_v11, %v792_v13 }
  0xcb   :  { %805 = vmatpush.bf16.msra.mxu2 %v797_v16  ;;  %824 = vmatpush.bf16.msra.mxu3 %v798_v17 }
  0xcc   :  { %v769_v21 = vpop.permute.xlu1 %768 }
  0xcd   :  { %v781_v22 = vadd.f32 %v769_v21, %v1348_v41  ;;  %v782_v23 = vadd.f32 %v769_v21, %v1353_v46  ;;  %v964_v41 = vld [vmem:[%s1841_s6 + $0x8] sm:$0xff]  ;;  %v963_v46 = vld [vmem:[%s1841_s6] sm:$0xff] }
  0xce   :  { %974 = vperm.xlu1 %1176, %v964_v41   ;;  %969 = vperm.xlu0 %1178, %v963_v46  }
  0xcf   :  { %v789_v26 = vmax.f32 %v781_v22, 0.0  ;;  %v790_v27 = vmax.f32 %v782_v23, 0.0 }
  0xd1   :  { %1114 = vmatmul.msk.bf16.gmra.mxu2 %vm192_vm1, %v1434_v19  ;;  %v795_v31 = vpack.c.bf16 %v789_v26, %v787_v24  ;;  %v796_v32 = vpack.c.bf16 %v790_v27, %v788_v25 }
  0xd2   :  { %1118 = vmatmul.msk.bf16.gmra.mxu0 %vm192_vm1, %v1434_v19 }
  0xd3   :  { %806 = vmatpush.bf16.msra.mxu2 %v795_v31  ;;  %825 = vmatpush.bf16.msra.mxu3 %v796_v32 }
  0xd4   :  { %1116 = vmatmul.msk.bf16.gmra.mxu3 %vm192_vm1, %v1434_v19  ;;  %1120 = vmatmul.msk.bf16.gmra.mxu1 %vm192_vm1, %v1434_v19 }
  0xd5   :  { %v877_v40 = vpop.permute.xlu1 %876 }
  0xd6   :  { %v885_v45 = vadd.f32 %v877_v40, %v1365_v56  ;;  %v886_v47 = vadd.f32 %v877_v40, %v1371_v61  ;;  %v896_v56 = vpack.c.bf16 %v890_v29, %v888_v44  ;;  %v966_v61 = vld [vmem:[%s1841_s6 + $0x18] sm:$0xff] }
  0xd7   :  { %984 = vperm.xlu1 %1176, %v966_v61  }
  0xd8   :  { %v893_v34 = vmax.f32 %v885_v45, 0.0  ;;  %v894_v58 = vmax.f32 %v886_v47, 0.0 }
  0xda   :  { %v897_v59 = vpack.c.bf16 %v893_v34, %v891_v54  ;;  %v898_v63 = vpack.c.bf16 %v894_v58, %v892_v57 }
  0xdc   :  { %905 = vmatpush.bf16.msra.mxu0 %v897_v59  ;;  %924 = vmatpush.bf16.msra.mxu1 %v898_v63 }
  0xe0   :  { %906 = vmatpush.bf16.msra.mxu0 %v895_v30  ;;  %925 = vmatpush.bf16.msra.mxu1 %v896_v56 }
  0xe1   :  { %1121 = vmatmul.msk.bf16.vlgmr.msrb.gmra.mxu2 %vm192_vm1, %v1399_v62 }
  0xe2   :  { %1125 = vmatmul.msk.bf16.vlgmr.msrb.gmra.mxu0 %vm192_vm1, %v1399_v62 }
  0xe4   :  { %1123 = vmatmul.msk.bf16.vlgmr.msrb.gmra.mxu3 %vm192_vm1, %v1399_v62  ;;  %1127 = vmatmul.msk.bf16.vlgmr.msrb.gmra.mxu1 %vm192_vm1, %v1399_v62 }
  0xf1   :  { %1122 = vmatmul.msk.bf16.gmra.mxu2 %vm192_vm1, %v1434_v19 }
  0xf2   :  { %1126 = vmatmul.msk.bf16.gmra.mxu0 %vm192_vm1, %v1434_v19 }
  0xf4   :  { %1124 = vmatmul.msk.bf16.gmra.mxu3 %vm192_vm1, %v1434_v19  ;;  %1128 = vmatmul.msk.bf16.gmra.mxu1 %vm192_vm1, %v1434_v19 }
  0xff   :  { %v1564_v10 = vpop.permute.xlu2 %169 }
 0x101   :  { %1129 = vmatmul.msk.bf16.vlgmr.msra.gmra.mxu2 %vm192_vm1, %v1399_v62 }
 0x102   :  { %1133 = vmatmul.msk.bf16.vlgmr.msra.gmra.mxu0 %vm192_vm1, %v1399_v62  ;;  %v1536_v0 = vpop.permute.xlu1 %164 }
 0x104   :  { %1131 = vmatmul.msk.bf16.vlgmr.msra.gmra.mxu3 %vm192_vm1, %v1399_v62  ;;  %1135 = vmatmul.msk.bf16.vlgmr.msra.gmra.mxu1 %vm192_vm1, %v1399_v62 }
 0x107   :  { %v1592_v49 = vpop.permute.xlu2 %179 }
 0x10e   :  { %v1577_v27 = vpop.permute.xlu1 %174 }
 0x111   :  { %1130 = vmatmul.msk.bf16.gmra.mxu2 %vm192_vm1, %v1434_v19 }
 0x112   :  { %1134 = vmatmul.msk.bf16.gmra.mxu0 %vm192_vm1, %v1434_v19 }
 0x114   :  { %1132 = vmatmul.msk.bf16.gmra.mxu3 %vm192_vm1, %v1434_v19  ;;  %1136 = vmatmul.msk.bf16.gmra.mxu1 %vm192_vm1, %v1434_v19  ;;  %v1547_v19 = vld [vmem:[%s1836_s1 + $0x8] sm:$0xff] }
 0x115   :  { %v1554_v6 = vperm.slane %v1547_v19, 1  ;;  %v1562_v37 = vperm.slane %v1547_v19, 0 }
 0x11e   :  { %v308_v62 = vpop.f32.mrf.mxu0 }
 0x11f   :  { %v309_v52 = vadd.f32 %v308_v62, %v1536_v0 }
 0x121   :  { %v327_v60 = vpop.f32.mrf.mxu1  ;;  %v337_v3 = vmax.f32 %v309_v52, 0.0 }
 0x122   :  { %v328_v53 = vadd.f32 %v327_v60, %v1536_v0 }
 0x123   :  { %v347_v12 = vmul.f32 %v1551_v51, %v337_v3 }
 0x124   :  { %v208_v4 = vpop.f32.mrf.mxu2  ;;  %v338_v5 = vmax.f32 %v328_v53, 0.0 }
 0x125   :  { %v209_v33 = vadd.f32 %v208_v4, %v1536_v0 }
 0x126   :  { %v310_v50 = vpop.f32.mrf.mxu0  ;;  %v348_v15 = vmul.f32 %v1554_v6, %v338_v5 }
 0x127   :  { %v227_v7 = vpop.f32.mrf.mxu3  ;;  %v237_v11 = vmax.f32 %v209_v33, 0.0  ;;  %v311_v17 = vadd.f32 %v310_v50, %v1564_v10 }
 0x128   :  { %v228_v9 = vadd.f32 %v227_v7, %v1536_v0 }
 0x129   :  { %v329_v13 = vpop.f32.mrf.mxu1  ;;  %v247_v16 = vmul.f32 %v1558_v8, %v237_v11  ;;  %v339_v26 = vmax.f32 %v311_v17, 0.0 }
 0x12a   :  { %v238_v14 = vmax.f32 %v228_v9, 0.0  ;;  %v330_v20 = vadd.f32 %v329_v13, %v1564_v10 }
 0x12b   :  { %v1572_v21 = vadd.f32 %v347_v12, %v247_v16  ;;  %v349_v43 = vmul.f32 %v1551_v51, %v339_v26 }
 0x12c   :  { %v248_v18 = vmul.f32 %v1562_v37, %v238_v14  ;;  %v210_v22 = vpop.f32.mrf.mxu2  ;;  %v340_v32 = vmax.f32 %v330_v20, 0.0 }
 0x12d   :  { %v211_v25 = vadd.f32 %v210_v22, %v1564_v10 }
 0x12e   :  { %v1574_v23 = vadd.f32 %v348_v15, %v248_v18  ;;  %v350_v2 = vmul.f32 %v1554_v6, %v340_v32 }
 0x12f   :  { %v229_v24 = vpop.f32.mrf.mxu3  ;;  %v313_v28 = vpop.f32.mrf.mxu0  ;;  %v239_v36 = vmax.f32 %v211_v25, 0.0 }
 0x130   :  { %v230_v31 = vadd.f32 %v229_v24, %v1564_v10  ;;  %v314_v40 = vadd.f32 %v313_v28, %v1577_v27 }
 0x131   :  { %v332_v38 = vpop.f32.mrf.mxu1  ;;  %v249_v42 = vmul.f32 %v1558_v8, %v239_v36  ;;  %v1628_v36 = vperm.slane %v1547_v19, 2 }
 0x132   :  { %v240_v39 = vmax.f32 %v230_v31, 0.0  ;;  %v333_v45 = vadd.f32 %v332_v38, %v1577_v27  ;;  %v341_v54 = vmax.f32 %v314_v40, 0.0  ;;  %v1617_v31 = vperm.slane %v1541_v1, 3 }
 0x133   :  { %v1586_v48 = vadd.f32 %v349_v43, %v249_v42 }
 0x134   :  { %v250_v47 = vmul.f32 %v1562_v37, %v240_v39  ;;  %v213_v57 = vpop.f32.mrf.mxu2  ;;  %v342_v58 = vmax.f32 %v333_v45, 0.0  ;;  %v351_v30 = vmul.f32 %v1551_v51, %v341_v54 }
 0x135   :  { %v214_v44 = vadd.f32 %v213_v57, %v1577_v27 }
 0x136   :  { %v1588_v34 = vadd.f32 %v350_v2, %v250_v47  ;;  %v352_v46 = vmul.f32 %v1554_v6, %v342_v58 }
 0x137   :  { %v232_v35 = vpop.f32.mrf.mxu3  ;;  %v315_v63 = vpop.f32.mrf.mxu0  ;;  %v241_v29 = vmax.f32 %v214_v44, 0.0 }
 0x138   :  { %v233_v59 = vadd.f32 %v232_v35, %v1577_v27  ;;  %v316_v55 = vadd.f32 %v315_v63, %v1592_v49 }
 0x139   :  { %v334_v56 = vpop.f32.mrf.mxu1  ;;  %v251_v61 = vmul.f32 %v1558_v8, %v241_v29 }
 0x13a   :  { %v242_v41 = vmax.f32 %v233_v59, 0.0  ;;  %v335_v60 = vadd.f32 %v334_v56, %v1592_v49  ;;  %v343_v7 = vmax.f32 %v316_v55, 0.0 }
 0x13b   :  { %v1600_v52 = vadd.f32 %v351_v30, %v251_v61 }
 0x13c   :  { %v252_v62 = vmul.f32 %v1562_v37, %v242_v41  ;;  %v215_v53 = vpop.f32.mrf.mxu2  ;;  %v344_v9 = vmax.f32 %v335_v60, 0.0  ;;  %v353_v16 = vmul.f32 %v1551_v51, %v343_v7 }
 0x13d   :  { %v216_v5 = vadd.f32 %v215_v53, %v1592_v49 }
 0x13e   :  { %v1602_v3 = vadd.f32 %v352_v46, %v252_v62  ;;  %v354_v20 = vmul.f32 %v1554_v6, %v344_v9 }
 0x13f   :  { %v234_v4 = vpop.f32.mrf.mxu3  ;;  %v508_v50 = vpop.f32.mrf.mxu0  ;;  %v243_v11 = vmax.f32 %v216_v5, 0.0 }
 0x140   :  { %v235_v33 = vadd.f32 %v234_v4, %v1592_v49  ;;  %v509_v14 = vadd.f32 %v508_v50, %v1536_v0 }
 0x141   :  { %v527_v12 = vpop.f32.mrf.mxu1  ;;  %v253_v15 = vmul.f32 %v1558_v8, %v243_v11  ;;  %v1621_v8 = vperm.slane %v1541_v1, 2 }
 0x142   :  { %v244_v13 = vmax.f32 %v235_v33, 0.0  ;;  %v528_v17 = vadd.f32 %v527_v12, %v1536_v0  ;;  %v537_v26 = vmax.f32 %v509_v14, 0.0 }
 0x143   :  { %v1612_v22 = vadd.f32 %v353_v16, %v253_v15 }
 0x144   :  { %v254_v18 = vmul.f32 %v1562_v37, %v244_v13  ;;  %v408_v24 = vpop.f32.mrf.mxu2  ;;  %v538_v28 = vmax.f32 %v528_v17, 0.0  ;;  %v1624_v37 = vperm.slane %v1547_v19, 3  ;;  %v547_v43 = vmul.f32 %v1617_v31, %v537_v26 }
 0x145   :  { %v409_v32 = vadd.f32 %v408_v24, %v1536_v0 }
 0x146   :  { %v1614_v25 = vadd.f32 %v354_v20, %v254_v18  ;;  %v548_v47 = vmul.f32 %v1624_v37, %v538_v28 }
 0x147   :  { %v427_v51 = vpop.f32.mrf.mxu3  ;;  %v437_v38 = vmax.f32 %v409_v32, 0.0  ;;  %v510_v39 = vpop.f32.mrf.mxu0 }
 0x148   :  { %v428_v6 = vadd.f32 %v427_v51, %v1536_v0  ;;  %v511_v57 = vadd.f32 %v510_v39, %v1564_v10 }
 0x149   :  { %v529_v42 = vpop.f32.mrf.mxu1  ;;  %v447_v45 = vmul.f32 %v1621_v8, %v437_v38 }
 0x14a   :  { %v438_v40 = vmax.f32 %v428_v6, 0.0  ;;  %v530_v35 = vadd.f32 %v529_v42, %v1564_v10  ;;  %v539_v41 = vmax.f32 %v511_v57, 0.0 }
 0x14b   :  { %v455_v54 = vadd.f32 %v447_v45, %v1572_v21 }
 0x14c   :  { %v448_v2 = vmul.f32 %v1628_v36, %v438_v40  ;;  %v410_v44 = vpop.f32.mrf.mxu2  ;;  %v540_v21 = vmax.f32 %v530_v35, 0.0  ;;  %v549_v53 = vmul.f32 %v1617_v31, %v539_v41 }
 0x14d   :  { %v411_v59 = vadd.f32 %v410_v44, %v1564_v10  ;;  %v1639_v29 = vadd.f32 %v547_v43, %v455_v54 }
 0x14e   :  { %v456_v58 = vadd.f32 %v448_v2, %v1574_v23  ;;  %v550_v5 = vmul.f32 %v1624_v37, %v540_v21  ;;  %v1678_v21 = vperm.slane %v1541_v1, 5 }
 0x14f   :  { %v429_v63 = vpop.f32.mrf.mxu3  ;;  %v439_v46 = vmax.f32 %v411_v59, 0.0  ;;  %v513_v61 = vpop.f32.mrf.mxu0 }
 0x150   :  { %v430_v30 = vadd.f32 %v429_v63, %v1564_v10  ;;  %v1642_v56 = vadd.f32 %v548_v47, %v456_v58  ;;  %v514_v42 = vadd.f32 %v513_v61, %v1577_v27 }
 0x151   :  { %v532_v62 = vpop.f32.mrf.mxu1  ;;  %v449_v23 = vmul.f32 %v1621_v8, %v439_v46 }
 0x152   :  { %v440_v55 = vmax.f32 %v430_v30, 0.0  ;;  %v533_v47 = vadd.f32 %v532_v62, %v1577_v27  ;;  %v541_v44 = vmax.f32 %v514_v42, 0.0 }
 0x153   :  { %v457_v4 = vadd.f32 %v449_v23, %v1586_v48 }
 0x154   :  { %v450_v60 = vmul.f32 %v1628_v36, %v440_v55  ;;  %v413_v33 = vpop.f32.mrf.mxu2  ;;  %v542_v41 = vmax.f32 %v533_v47, 0.0  ;;  %v1681_v55 = vperm.slane %v1547_v19, 5 }
 0x155   :  { %v1650_v50 = vadd.f32 %v549_v53, %v457_v4  ;;  %v414_v28 = vadd.f32 %v413_v33, %v1577_v27 }
 0x156   :  { %v458_v7 = vadd.f32 %v450_v60, %v1588_v34 }
 0x157   :  { %v432_v9 = vpop.f32.mrf.mxu3  ;;  %v515_v12 = vpop.f32.mrf.mxu0  ;;  %v441_v43 = vmax.f32 %v414_v28, 0.0 }
 0x158   :  { %v1652_v11 = vadd.f32 %v550_v5, %v458_v7  ;;  %v433_v6 = vadd.f32 %v432_v9, %v1577_v27  ;;  %v516_v63 = vadd.f32 %v515_v12, %v1592_v49  ;;  %v551_v7 = vmul.f32 %v1617_v31, %v541_v44 }
 0x159   :  { %v534_v13 = vpop.f32.mrf.mxu1  ;;  %v451_v59 = vmul.f32 %v1621_v8, %v441_v43  ;;  %v1717_v44 = vperm.slane %v1541_v1, 7 }
 0x15a   :  { %v442_v2 = vmax.f32 %v433_v6, 0.0  ;;  %v535_v30 = vadd.f32 %v534_v13, %v1592_v49  ;;  %v543_v9 = vmax.f32 %v516_v63, 0.0 }
 0x15b   :  { %v459_v33 = vadd.f32 %v451_v59, %v1600_v52 }
 0x15c   :  { %v415_v14 = vpop.f32.mrf.mxu2  ;;  %v452_v46 = vmul.f32 %v1628_v36, %v442_v2  ;;  %v544_v12 = vmax.f32 %v535_v30, 0.0 }
 0x15d   :  { %v416_v38 = vadd.f32 %v415_v14, %v1592_v49  ;;  %v552_v14 = vmul.f32 %v1624_v37, %v542_v41  ;;  %v1709_v43 = vadd.f32 %v551_v7, %v459_v33 }
 0x15f   :  { %v434_v15 = vpop.f32.mrf.mxu3  ;;  %v708_v16 = vpop.f32.mrf.mxu0  ;;  %v443_v57 = vmax.f32 %v416_v38, 0.0 }
 0x160   :  { %v435_v39 = vadd.f32 %v434_v15, %v1592_v49  ;;  %v709_v61 = vadd.f32 %v708_v16, %v1536_v0 }
 0x161   :  { %v727_v17 = vpop.f32.mrf.mxu1  ;;  %v453_v23 = vmul.f32 %v1621_v8, %v443_v57  ;;  %v460_v8 = vadd.f32 %v452_v46, %v1602_v3 }
 0x162   :  { %v444_v58 = vmax.f32 %v435_v39, 0.0  ;;  %v728_v53 = vadd.f32 %v727_v17, %v1536_v0  ;;  %v737_v16 = vmax.f32 %v709_v61, 0.0 }
 0x163   :  { %v461_v28 = vadd.f32 %v453_v23, %v1612_v22 }
 0x164   :  { %v608_v18 = vpop.f32.mrf.mxu2  ;;  %v454_v60 = vmul.f32 %v1628_v36, %v444_v58  ;;  %v738_v38 = vmax.f32 %v728_v53, 0.0  ;;  %v1712_v58 = vadd.f32 %v552_v14, %v460_v8  ;;  %v747_v22 = vmul.f32 %v1678_v21, %v737_v16 }
 0x165   :  { %v609_v62 = vadd.f32 %v608_v18, %v1536_v0  ;;  %v1699_v18 = vperm.slane %v1541_v1, 4 }
 0x166   :  { %v462_v6 = vadd.f32 %v454_v60, %v1614_v25 }
 0x167   :  { %v627_v20 = vpop.f32.mrf.mxu3  ;;  %v710_v24 = vpop.f32.mrf.mxu0  ;;  %v637_v17 = vmax.f32 %v609_v62, 0.0 }
 0x168   :  { %v628_v4 = vadd.f32 %v627_v20, %v1536_v0  ;;  %v1702_v20 = vperm.slane %v1547_v19, 4  ;;  %v711_v42 = vadd.f32 %v710_v24, %v1564_v10 }
 0x169   :  { %v729_v48 = vpop.f32.mrf.mxu1  ;;  %v647_v25 = vmul.f32 %v1699_v18, %v637_v17 }
 0x16a   :  { %v638_v39 = vmax.f32 %v628_v4, 0.0  ;;  %v730_v47 = vadd.f32 %v729_v48, %v1564_v10  ;;  %v739_v30 = vmax.f32 %v711_v42, 0.0 }
 0x16b   :  { %v655_v7 = vadd.f32 %v647_v25, %v1639_v29 }
 0x16c   :  { %v610_v26 = vpop.f32.mrf.mxu2  ;;  %v648_v24 = vmul.f32 %v1702_v20, %v638_v39  ;;  %v740_v23 = vmax.f32 %v730_v47, 0.0  ;;  %v749_v16 = vmul.f32 %v1678_v21, %v739_v30 }
 0x16d   :  { %v611_v36 = vadd.f32 %v610_v26, %v1564_v10  ;;  %v553_v26 = vmul.f32 %v1617_v31, %v543_v9  ;;  %v1720_v31 = vperm.slane %v1547_v19, 7 }
 0x16f   :  { %v629_v32 = vpop.f32.mrf.mxu3  ;;  %v1654_v51 = vpop.f32.mrf.mxu0  ;;  %v639_v2 = vmax.f32 %v611_v36, 0.0  ;;  %v1724_v59 = vadd.f32 %v553_v26, %v461_v28  ;;  %v1744_v36 = vperm.slane %v1547_v19, 6  ;;  %v755_v19 = vadd.f32 %v747_v22, %v655_v7 }
 0x170   :  { %v630_v15 = vadd.f32 %v629_v32, %v1564_v10  ;;  %v554_v32 = vmul.f32 %v1624_v37, %v544_v12  ;;  %v748_v37 = vmul.f32 %v1681_v55, %v738_v38  ;;  %v714_v41 = vadd.f32 %v1654_v51, %v1577_v27 }
 0x171   :  { %v1656_v34 = vpop.f32.mrf.mxu1  ;;  %v649_v60 = vmul.f32 %v1699_v18, %v639_v2  ;;  %v1739_v51 = vperm.slane %v1541_v1, 6  ;;  %v750_v1 = vmul.f32 %v1681_v55, %v740_v23 }
 0x172   :  { %v640_v57 = vmax.f32 %v630_v15, 0.0  ;;  %v1726_v48 = vadd.f32 %v554_v32, %v462_v6  ;;  %v733_v46 = vadd.f32 %v1656_v34, %v1577_v27  ;;  %v656_v34 = vadd.f32 %v648_v24, %v1642_v56 }
 0x173   :  { %v741_v17 = vmax.f32 %v714_v41, 0.0  ;;  %v657_v28 = vadd.f32 %v649_v60, %v1650_v50 }
 0x174   :  { %v1662_v40 = vpop.f32.mrf.mxu2  ;;  %v650_v53 = vmul.f32 %v1702_v20, %v640_v57  ;;  %v742_v29 = vmax.f32 %v733_v46, 0.0  ;;  %v756_v26 = vadd.f32 %v748_v37, %v656_v34 }
 0x175   :  { %v751_v50 = vmul.f32 %v1678_v21, %v741_v17  ;;  %v757_v22 = vadd.f32 %v749_v16, %v657_v28 }
 0x176   :  { %v658_v56 = vadd.f32 %v650_v53, %v1652_v11  ;;  %v752_v11 = vmul.f32 %v1681_v55, %v742_v29  ;;  %v970_v29 = vpop.permute.xlu0 %969 }
 0x177   :  { %v1665_v45 = vpop.f32.mrf.mxu3  ;;  %v1668_v54 = vpop.f32.mrf.mxu0 }
 0x178   :  { %v758_v25 = vadd.f32 %v750_v1, %v658_v56  ;;  %v1767_v7 = vadd.f32 %v1668_v54, %v1592_v49 }
 0x179   :  { %v1670_v35 = vpop.f32.mrf.mxu1 }
 0x17c   :  { %v1688_v5 = vpop.f32.mrf.mxu2 }
 0x17f   :  { %v1692_v13 = vpop.f32.mrf.mxu3  ;;  %v908_v52 = vpop.f32.mrf.mxu0 }
 0x180   :  { %v909_v33 = vadd.f32 %v908_v52, %v1536_v0  ;;  %v614_v52 = vadd.f32 %v1662_v40, %v1577_v27  ;;  %v635_v34 = vadd.f32 %v1692_v13, %v1592_v49 }
 0x181   :  { %v927_v3 = vpop.f32.mrf.mxu1 }
 0x182   :  { %v928_v14 = vadd.f32 %v927_v3, %v1536_v0  ;;  %v937_v6 = vmax.f32 %v909_v33, 0.0  ;;  %v641_v47 = vmax.f32 %v614_v52, 0.0 }
 0x184   :  { %v808_v63 = vpop.f32.mrf.mxu2  ;;  %v938_v3 = vmax.f32 %v928_v14, 0.0  ;;  %v947_v37 = vmul.f32 %v1717_v44, %v937_v6 }
 0x185   :  { %v809_v61 = vadd.f32 %v808_v63, %v1536_v0 }
 0x187   :  { %v827_v62 = vpop.f32.mrf.mxu3  ;;  %v837_v9 = vmax.f32 %v809_v61, 0.0  ;;  %v910_v12 = vpop.f32.mrf.mxu0  ;;  %v948_v61 = vmul.f32 %v1720_v31, %v938_v3 }
 0x188   :  { %v828_v4 = vadd.f32 %v827_v62, %v1536_v0  ;;  %v633_v0 = vadd.f32 %v1665_v45, %v1577_v27  ;;  %v911_v39 = vadd.f32 %v910_v12, %v1564_v10  ;;  %v1775_v12 = vadd.f32 %v1670_v35, %v1592_v49 }
 0x189   :  { %v929_v15 = vpop.f32.mrf.mxu1  ;;  %v847_v38 = vmul.f32 %v1739_v51, %v837_v9 }
 0x18a   :  { %v838_v8 = vmax.f32 %v828_v4, 0.0  ;;  %v930_v40 = vadd.f32 %v929_v15, %v1564_v10  ;;  %v642_v57 = vmax.f32 %v633_v0, 0.0  ;;  %v939_v30 = vmax.f32 %v911_v39, 0.0  ;;  %v975_v39 = vpop.permute.xlu1 %974 }
 0x18b   :  { %v855_v63 = vadd.f32 %v847_v38, %v755_v19  ;;  %v651_v4 = vmul.f32 %v1699_v18, %v641_v47  ;;  %v644_v38 = vmax.f32 %v635_v34, 0.0  ;;  %v980_v34 = vpop.permute.xlu2 %979 }
 0x18c   :  { %v848_v32 = vmul.f32 %v1744_v36, %v838_v8  ;;  %v810_v42 = vpop.f32.mrf.mxu2  ;;  %v940_v23 = vmax.f32 %v930_v40, 0.0  ;;  %v652_v9 = vmul.f32 %v1702_v20, %v642_v57  ;;  %v949_v8 = vmul.f32 %v1717_v44, %v939_v30 }
 0x18d   :  { %v811_v45 = vadd.f32 %v810_v42, %v1564_v10  ;;  %v955_v15 = vadd.f32 %v947_v37, %v855_v63  ;;  %v659_v28 = vadd.f32 %v651_v4, %v1709_v43  ;;  %v654_v30 = vmul.f32 %v1702_v20, %v644_v38 }
 0x18e   :  { %v856_v62 = vadd.f32 %v848_v32, %v756_v26  ;;  %v660_v19 = vadd.f32 %v652_v9, %v1712_v58 }
 0x18f   :  { %v829_v2 = vpop.f32.mrf.mxu3  ;;  %v839_v41 = vmax.f32 %v811_v45, 0.0  ;;  %v913_v46 = vpop.f32.mrf.mxu0  ;;  %v987_v32 = vmul.f32 %v970_v29, %v955_v15  ;;  %v759_v37 = vadd.f32 %v751_v50, %v659_v28 }
 0x190   :  { %v830_v24 = vadd.f32 %v829_v2, %v1564_v10  ;;  %v616_v10 = vadd.f32 %v1688_v5, %v1592_v49  ;;  %v914_v16 = vadd.f32 %v913_v46, %v1577_v27  ;;  %v950_v5 = vmul.f32 %v1720_v31, %v940_v23 }
 0x191   :  { %v932_v53 = vpop.f32.mrf.mxu1  ;;  %v849_v33 = vmul.f32 %v1739_v51, %v839_v41  ;;  %v956_v52 = vadd.f32 %v948_v61, %v856_v62  ;;  %v743_v61 = vmax.f32 %v1767_v7, 0.0  ;;  %v662_v7 = vadd.f32 %v654_v30, %v1726_v48 }
 0x192   :  { %v840_v60 = vmax.f32 %v830_v24, 0.0  ;;  %v933_v1 = vadd.f32 %v932_v53, %v1577_v27  ;;  %v643_v56 = vmax.f32 %v616_v10, 0.0  ;;  %v941_v42 = vmax.f32 %v914_v16, 0.0 }
 0x193   :  { %v857_v54 = vadd.f32 %v849_v33, %v757_v22  ;;  %v988_v45 = vmul.f32 %v970_v29, %v956_v52 }
 0x194   :  { %v850_v14 = vmul.f32 %v1744_v36, %v840_v60  ;;  %v813_v35 = vpop.f32.mrf.mxu2  ;;  %v942_v57 = vmax.f32 %v933_v1, 0.0  ;;  %v951_v62 = vmul.f32 %v1717_v44, %v941_v42 }
 0x195   :  { %v957_v13 = vadd.f32 %v949_v8, %v857_v54  ;;  %v814_v0 = vadd.f32 %v813_v35, %v1577_v27 }
 0x196   :  { %v858_v17 = vadd.f32 %v850_v14, %v758_v25  ;;  %v653_v25 = vmul.f32 %v1699_v18, %v643_v56  ;;  %v744_v18 = vmax.f32 %v1775_v12, 0.0  ;;  %v952_v50 = vmul.f32 %v1720_v31, %v942_v57 }
 0x197   :  { %v832_v6 = vpop.f32.mrf.mxu3  ;;  %v989_v40 = vmul.f32 %v975_v39, %v957_v13  ;;  %v841_v47 = vmax.f32 %v814_v0, 0.0  ;;  %v915_v22 = vpop.f32.mrf.mxu0  ;;  %v753_v12 = vmul.f32 %v1678_v21, %v743_v61 }
 0x198   :  { %v958_v3 = vadd.f32 %v950_v5, %v858_v17  ;;  %v833_v26 = vadd.f32 %v832_v6, %v1577_v27  ;;  %v760_v27 = vadd.f32 %v752_v11, %v660_v19  ;;  %v916_v60 = vadd.f32 %v915_v22, %v1592_v49  ;;  %v985_v19 = vpop.permute.xlu1 %984 }
 0x199   :  { %v995_v24 = vadd.f32 %v989_v40, %v987_v32  ;;  %v851_v58 = vmul.f32 %v1739_v51, %v841_v47  ;;  %v934_v63 = vpop.f32.mrf.mxu1  ;;  %v661_v20 = vadd.f32 %v653_v25, %v1724_v59  ;;  %v754_v5 = vmul.f32 %v1681_v55, %v744_v18  ;;  %v1095_v25 = vld [vmem:[%s1836_s1 + $0x10] ss:$8 sm:$0x3] }
 0x19a   :  { %v990_v2 = vmul.f32 %v975_v39, %v958_v3  ;;  %v842_v43 = vmax.f32 %v833_v26, 0.0  ;;  %v935_v4 = vadd.f32 %v934_v63, %v1592_v49  ;;  %v943_v15 = vmax.f32 %v916_v60, 0.0  ;;  %v1035_v18 = vld [vmem:[%s1842_s7 + $0x10] sm:$0xff] }
 0x19b   :  { %v859_v23 = vadd.f32 %v851_v58, %v759_v37  ;;  %v761_v1 = vadd.f32 %v753_v12, %v661_v20  ;;  %v762_v48 = vadd.f32 %v754_v5, %v662_v7  ;;  %v1096_v37 = vld [vmem:[%s1836_s1 + $0x11] ss:$8 sm:$0x3] }
 0x19c   :  { %v1004_v41 = vadd.f32 %v990_v2, %v988_v45  ;;  %v852_v46 = vmul.f32 %v1744_v36, %v842_v43  ;;  %v815_v10 = vpop.f32.mrf.mxu2  ;;  %v944_v29 = vmax.f32 %v935_v4, 0.0  ;;  %v1034_v4 = vld [vmem:[%s1842_s7 + $0x8] sm:$0xff] }
 0x19d   :  { %v959_v11 = vadd.f32 %v951_v62, %v859_v23  ;;  %v816_v33 = vadd.f32 %v815_v10, %v1592_v49 }
 0x19e   :  { %v860_v53 = vadd.f32 %v852_v46, %v760_v27  ;;  %v954_v21 = vmul.f32 %v1720_v31, %v944_v29  ;;  %v1028_v46 = vlaneseq }
 0x19f   :  { %v834_v9 = vpop.f32.mrf.mxu3  ;;  %v991_v54 = vmul.f32 %v980_v34, %v959_v11  ;;  %v843_v16 = vmax.f32 %v816_v33, 0.0 }
 0x1a0   :  { %v960_v14 = vadd.f32 %v952_v50, %v860_v53  ;;  %v835_v8 = vadd.f32 %v834_v9, %v1592_v49  ;;  %v953_v49 = vmul.f32 %v1717_v44, %v943_v15  ;;  %vm1030_vm3 = vcmp.lt.s32.totalorder %v1028_v46, 256  ;;  %v1036_v50 = vld [vmem:[%s1842_s7 + $0x18] sm:$0xff]  ;;  %v1033_v53 = vld [vmem:[%s1842_s7] sm:$0xff] }
 0x1a1   :  { %v996_v52 = vadd.f32 %v995_v24, %v991_v54  ;;  %v853_v35 = vmul.f32 %v1739_v51, %v843_v16 }
 0x1a2   :  { %v992_v17 = vmul.f32 %v980_v34, %v960_v14  ;;  %v844_v59 = vmax.f32 %v835_v8, 0.0 }
 0x1a3   :  { %v861_v13 = vadd.f32 %v853_v35, %v761_v1 }
 0x1a4   :  { %v1005_v28 = vadd.f32 %v1004_v41, %v992_v17  ;;  %v854_v56 = vmul.f32 %v1744_v36, %v844_v59 }
 0x1a5   :  { %v961_v6 = vadd.f32 %v953_v49, %v861_v13 }
 0x1a6   :  { %v862_v0 = vadd.f32 %v854_v56, %v762_v48 }
 0x1a7   :  { %v993_v38 = vmul.f32 %v985_v19, %v961_v6 }
 0x1a8   :  { %v962_v55 = vadd.f32 %v954_v21, %v862_v0 }
 0x1a9   :  { %v997_v3 = vadd.f32 %v996_v52, %v993_v38 }
 0x1aa   :  { %v994_v39 = vmul.f32 %v985_v19, %v962_v55 }
 0x1ab   :  { %v998_v32 = vrot.slane %v997_v3, 4 }
 0x1ac   :  { %v1006_v26 = vadd.f32 %v1005_v28, %v994_v39 }
 0x1ad   :  { %v999_v51 = vadd.f32 %v998_v32, %v997_v3 }
 0x1ae   :  { %v1007_v40 = vrot.slane %v1006_v26, 4 }
 0x1af   :  { %v1000_v47 = vrot.slane %v999_v51, 2 }
 0x1b0   :  { %v1008_v42 = vadd.f32 %v1007_v40, %v1006_v26 }
 0x1b1   :  { %v1001_v36 = vadd.f32 %v1000_v47, %v999_v51 }
 0x1b2   :  { %v1009_v45 = vrot.slane %v1008_v42, 2 }
 0x1b3   :  { %v1002_v44 = vrot.slane %v1001_v36, 1 }
 0x1b4   :  { %v1010_v2 = vadd.f32 %v1009_v45, %v1008_v42 }
 0x1b5   :  { %v1003_v31 = vadd.f32 %v1002_v44, %v1001_v36 }
 0x1b6   :  { %v1011_v57 = vrot.slane %v1010_v2, 1 }
 0x1b8   :  { %v1012_v43 = vadd.f32 %v1011_v57, %v1010_v2 }
 0x1ba   :  { %v1015_v22 = vrot.slane %v1012_v43, 7 }
 0x1bc   :  { %v1017_v24 = vsel %vm1016_vm2, %v1003_v31, %v1015_v22 }
 0x1bd   :  { %v1019_v58 = vmul.f32 %v1095_v25, %v1017_v24 }
 0x1bf   :  { %v1020_v63 = vadd.f32 %v1096_v37, %v1019_v58 }
 0x1c1   :  { %v1021_v30 = vmul.f32 1.442695, %v1020_v63  ;;  %v1023_v41 = vsub.f32 0.0, %v1020_v63 }
 0x1c3   :  { %v1024_v27 = vmul.f32 1.442695, %v1023_v41  ;;  %1179 = vpow2.f32 %v1021_v30 }
 0x1c5   :  { %1181 = vpow2.f32 %v1024_v27 }
 0x1c9   :  { %v1180_v61 = vpop.eup %1179 }
 0x1cb   :  { %v1182_v62 = vpop.eup %1181 }
 0x1cc   :  { %v1026_v23 = vsub.f32 %v1180_v61, %v1182_v62 }
 0x1ce   :  { %v1027_v60 = vmul.f32 0.5, %v1026_v23 }
 0x1d0   :  { %v1038_v10 = vperm.slane %v1027_v60, 0  ;;  %v1039_v20 = vperm.slane %v1027_v60, 1  ;;  %1032 = vst.msk [vmem:[#allocation2] sm:$0x3] %vm1030_vm3, %v1027_v60 }
 0x1d1   :  { %1065 = dma.vmem_to_hbm [thread:$0]  %s1061_s10, 32, %s1063_s29, [#allocation3]  }
 0x1d2   :  { %v1044_v11 = vmul.f32 %v1038_v10, %v1035_v18  ;;  %v1045_v33 = vmul.f32 %v1039_v20, %v1036_v50  ;;  %v1042_v9 = vmul.f32 %v1038_v10, %v1033_v53  ;;  %v1043_v7 = vmul.f32 %v1039_v20, %v1034_v4 }
 0x1d4   :  { %v1049_v34 = vadd.f32 %v1045_v33, %v1044_v11  ;;  %v1046_v14 = vadd.f32 %v1043_v7, %v1042_v9 }
 0x1d6   :  { %1050 = vadd.xlane.f32.xlu0 %v1049_v34  ;;  %1047 = vadd.xlane.f32.xlu2 %v1046_v14 }
 0x249   :  { %v1051_v8 = vpop.xlane.xlu0 %1050  ;;  %v1048_v12 = vpop.xlane.xlu2 %1047 }
 0x24a   :  { %1054 = vst.msk [vmem:[%s1844_s9 + $0x8] sm:$0xff] %vm1052_vm4, %v1051_v8 }
 0x24b   :  { %1053 = vst.msk [vmem:[%s1844_s9] sm:$0xff] %vm1052_vm4, %v1048_v12 }
 0x24c   :  { %1207 = dma.done.wait [#allocation3], 32  }
 0x24d   :  { %1208 = vsyncadd [#allocation3], 4294967264 }
 0x24e   :  { %1074 = vsyncpa [#allocation3], 1 }

</bundles_post_ra>
